<compile_context>
chip_gen: v7x
topology: tpu7x:2x2x1
jax: 0.10.0
libtpu: 0.0.40
codegen_flags: <defaults>
</compile_context>

<pallas_src>
import functools

import jax
import jax.numpy as jnp
from jax.experimental import pallas as pl
from jax.experimental.pallas import tpu as pltpu

EPS = 1e-5
TN = 128       # output-channel tile (all real couts here <= 64, padded to one lane tile)
TM_MAX = 256   # row tile: 1-2 grid steps per layer, still >=2 blocks for v7x megacore


def _round_up(x, m):
    return (x + m - 1) // m * m


# ----------------------------------------------------------------------------
# Fused Pallas kernel: single-K-step matmul + bias (+ residual) + activation
# ----------------------------------------------------------------------------
def _fused_matmul_kernel(a_ref, w_ref, b_ref, *rest, activation, with_residual):
    if with_residual:
        r_ref, o_ref = rest
    else:
        (o_ref,) = rest
    # bf16 x bf16 -> f32 accumulate on the MXU; full K in one dot (no scratch / phases).
    y = jnp.dot(a_ref[...], w_ref[...], preferred_element_type=jnp.float32)
    y = y + b_ref[...]
    if with_residual:
        y = y + r_ref[...]
    if activation == "relu":
        y = jnp.maximum(y, 0.0)
    elif activation == "tanh":
        y = jnp.tanh(y)
    o_ref[...] = y.astype(o_ref.dtype)


def fused_matmul(a, w_p, bias_p, n_cols, activation, residual=None):
    """(M,K) f32 A  @  (Kp,Np) bf16 pre-padded weights (BN scale folded in) + bias row,
    optional residual (M, n_cols) added before activation.  Returns (M, n_cols) f32."""
    M, K = a.shape
    Kp, Np = w_p.shape
    assert K <= Kp and n_cols <= Np

    if M <= TM_MAX:
        Mp = _round_up(M, 16)      # bf16 sublane packing
        TM = Mp                    # single M block
    else:
        TM = TM_MAX
        Mp = _round_up(M, TM)

    a_p = jnp.zeros((Mp, Kp), jnp.bfloat16).at[:M, :K].set(a.astype(jnp.bfloat16))

    in_specs = [
        pl.BlockSpec((TM, Kp), lambda i, j: (i, 0)),   # A row block, full K
        pl.BlockSpec((Kp, TN), lambda i, j: (0, j)),   # weight column block
        pl.BlockSpec((1, TN), lambda i, j: (0, j)),    # bias row
    ]
    args = [a_p, w_p, bias_p]
    if residual is not None:
        r_p = jnp.zeros((Mp, Np), jnp.float32).at[:M, :n_cols].set(residual)
        in_specs.append(pl.BlockSpec((TM, TN), lambda i, j: (i, j)))
        args.append(r_p)

    out = pl.pallas_call(
        functools.partial(_fused_matmul_kernel, activation=activation,
                          with_residual=residual is not None),
        out_shape=jax.ShapeDtypeStruct((Mp, Np), jnp.float32),
        grid_spec=pltpu.PrefetchScalarGridSpec(
            num_scalar_prefetch=0,
            grid=(Mp // TM, Np // TN),
            in_specs=in_specs,
            out_specs=pl.BlockSpec((TM, TN), lambda i, j: (i, j)),
        ),
        compiler_params=pltpu.CompilerParams(
            dimension_semantics=("parallel", "parallel"),
            vmem_limit_bytes=32 * 1024 * 1024,
        ),
    )(*args)
    return out[:M, :n_cols]


# ----------------------------------------------------------------------------
# Conv layers (glue: padding / im2col; all compute inside the Pallas kernel)
# ----------------------------------------------------------------------------
def _im2col(x, kh, kw, stride):
    # x: (N, H, W, C), already spatially padded
    n, h, w, c = x.shape
    ho = (h - kh) // stride + 1
    wo = (w - kw) // stride + 1
    cols = []
    for i in range(kh):
        for j in range(kw):
            cols.append(x[:, i:i + (ho - 1) * stride + 1:stride,
                          j:j + (wo - 1) * stride + 1:stride, :])
    patches = jnp.stack(cols, axis=3)                    # (n, ho, wo, kh*kw, c)
    return patches.reshape(n * ho * wo, kh * kw * c), (n, ho, wo)


def conv2d(x, prep, *, kh, kw, cout, stride=1, padding=0, pad_mode="zero",
           activation="none", residual=None):
    if padding > 0:
        mode = "reflect" if pad_mode == "reflect" else "constant"
        x = jnp.pad(x, ((0, 0), (padding, padding), (padding, padding), (0, 0)),
                    mode=mode)
    a, (n, ho, wo) = _im2col(x, kh, kw, stride)
    res = None if residual is None else residual.reshape(n * ho * wo, cout)
    y = fused_matmul(a, prep["w"], prep["b"], cout, activation, residual=res)
    return y.reshape(n, ho, wo, cout)


def conv_transpose2d(x, prep, *, cout, activation="none"):
    """ConvTranspose2d(k=3, stride=2, padding=1, output_padding=1) via sub-pixel
    decomposition: a single 2x2-tap conv producing 4*cout parity-group columns,
    interleaved afterwards (no zero-stuffed input, no wasted MXU work)."""
    n, h, w, _ = x.shape
    xp = jnp.pad(x, ((0, 0), (0, 1), (0, 1), (0, 0)))    # zero pad bottom/right by 1
    a, _ = _im2col(xp, 2, 2, 1)                          # (n*h*w, 4*cin)
    y = fused_matmul(a, prep["w"], prep["b"], 4 * cout, activation)
    y = y.reshape(n, h, w, 2, 2, cout)                   # (.., row_parity, col_parity, c)
    y = jnp.transpose(y, (0, 1, 3, 2, 4, 5)).reshape(n, 2 * h, 2 * w, cout)
    return y


# ----------------------------------------------------------------------------
# Parameters: PyTorch-layout init + one-time kernel-ready preparation
# ----------------------------------------------------------------------------
def _bn_init(c):
    # matches nn.BatchNorm2d defaults: gamma=1, beta=0, running_mean=0, running_var=1
    return (jnp.ones((c,), jnp.float32), jnp.zeros((c,), jnp.float32),
            jnp.zeros((c,), jnp.float32), jnp.ones((c,), jnp.float32))


def init_params(key, input_nc, output_nc, ngf, n_blocks):
    keys = iter(jax.random.split(key, 16 + 4 * n_blocks))

    def w(shape):
        return jax.random.normal(next(keys), shape, jnp.float32) * 0.05

    p = {}
    p["down_w"] = w((1, 1, 2, 2))               # Conv2d(1,1,k=2,s=2)
    p["down_b"] = w((1,))
    p["enc0_w"] = w((ngf, 2 * input_nc, 7, 7))  # Conv2d(2*input_nc, ngf, k=7), no bias
    p["enc0_bn"] = _bn_init(ngf)
    p["down1_w"] = w((ngf * 2, ngf, 3, 3)); p["down1_bn"] = _bn_init(ngf * 2)
    p["down2_w"] = w((ngf * 4, ngf * 2, 3, 3)); p["down2_bn"] = _bn_init(ngf * 4)
    dim = ngf * 4
    p["resblocks"] = [
        {"w1": w((dim, dim, 3, 3)), "bn1": _bn_init(dim),
         "w2": w((dim, dim, 3, 3)), "bn2": _bn_init(dim)}
        for _ in range(n_blocks)
    ]
    p["up1_w"] = w((ngf * 4, ngf * 2, 3, 3)); p["up1_bn"] = _bn_init(ngf * 2)  # ConvT layout
    p["up2_w"] = w((ngf * 2, ngf, 3, 3)); p["up2_bn"] = _bn_init(ngf)
    p["final_w"] = w((output_nc, ngf, 7, 7))
    p["final_b"] = w((output_nc,))
    return p


def _fold_pad(B, conv_bias, bn, cout, groups=1):
    """Fold BN scale into the weight columns, fold bias, pre-pad and cast to bf16."""
    K, N = B.shape
    if conv_bias is None:
        conv_bias = jnp.zeros((cout,), jnp.float32)
    if bn is not None:
        gamma, beta, mean, var = bn
        scale = gamma * jax.lax.rsqrt(var + EPS)
        bias = beta + (conv_bias - mean) * scale
    else:
        scale = jnp.ones((cout,), jnp.float32)
        bias = conv_bias
    scale_full = jnp.tile(scale, groups)
    bias_full = jnp.tile(bias, groups)
    Bf = B * scale_full[None, :]
    Kp, Np = _round_up(K, 128), _round_up(N, TN)
    w_p = jnp.zeros((Kp, Np), jnp.bfloat16).at[:K, :N].set(Bf.astype(jnp.bfloat16))
    b_p = jnp.zeros((1, Np), jnp.float32).at[0, :N].set(bias_full)
    return {"w": w_p, "b": b_p}


def _prep_conv(w, conv_bias=None, bn=None):
    cout, cin, kh, kw = w.shape  # PyTorch Conv2d layout
    B = jnp.transpose(w, (2, 3, 1, 0)).reshape(kh * kw * cin, cout)
    return _fold_pad(B, conv_bias, bn, cout)


def _prep_conv_transpose(w, bn=None):
    """Sub-pixel weight for ConvTranspose2d(k=3, s=2, p=1, output_padding=1).
    Columns are [even-even | even-odd | odd-even | odd-odd] output-parity groups;
    rows follow a 2x2 im2col of the (bottom/right zero-padded) input."""
    cin, cout, kh, kw = w.shape  # PyTorch ConvTranspose2d layout
    wt = jnp.transpose(w, (2, 3, 0, 1))  # (kh, kw, cin, cout)
    B = jnp.zeros((4 * cin, 4 * cout), jnp.float32)

    def tap(di, dj):            # row block of the 2x2 im2col tap (di, dj)
        t = di * 2 + dj
        return slice(t * cin, (t + 1) * cin)

    def grp(g):                 # column block of output-parity group g
        return slice(g * cout, (g + 1) * cout)

    # y[2m, 2n]     = x[m, n] @ w[1,1]
    B = B.at[tap(0, 0), grp(0)].set(wt[1, 1])
    # y[2m, 2n+1]   = x[m, n] @ w[1,2] + x[m, n+1] @ w[1,0]
    B = B.at[tap(0, 0), grp(1)].set(wt[1, 2])
    B = B.at[tap(0, 1), grp(1)].set(wt[1, 0])
    # y[2m+1, 2n]   = x[m, n] @ w[2,1] + x[m+1, n] @ w[0,1]
    B = B.at[tap(0, 0), grp(2)].set(wt[2, 1])
    B = B.at[tap(1, 0), grp(2)].set(wt[0, 1])
    # y[2m+1, 2n+1] = all four taps
    B = B.at[tap(0, 0), grp(3)].set(wt[2, 2])
    B = B.at[tap(0, 1), grp(3)].set(wt[2, 0])
    B = B.at[tap(1, 0), grp(3)].set(wt[0, 2])
    B = B.at[tap(1, 1), grp(3)].set(wt[0, 0])
    return _fold_pad(B, None, bn, cout, groups=4)


def prepare_params(p):
    """One-time conversion to kernel-ready (pre-padded, pre-transposed, BN-folded,
    bf16) matmul operands; done outside the forward pass."""
    return {
        "down": _prep_conv(p["down_w"], conv_bias=p["down_b"]),
        "enc0": _prep_conv(p["enc0_w"], bn=p["enc0_bn"]),
        "down1": _prep_conv(p["down1_w"], bn=p["down1_bn"]),
        "down2": _prep_conv(p["down2_w"], bn=p["down2_bn"]),
        "resblocks": [
            {"c1": _prep_conv(blk["w1"], bn=blk["bn1"]),
             "c2": _prep_conv(blk["w2"], bn=blk["bn2"])}
            for blk in p["resblocks"]
        ],
        "up1": _prep_conv_transpose(p["up1_w"], bn=p["up1_bn"]),
        "up2": _prep_conv_transpose(p["up2_w"], bn=p["up2_bn"]),
        "final": _prep_conv(p["final_w"], conv_bias=p["final_b"]),
    }


# ----------------------------------------------------------------------------
# PTGenerator forward
# ----------------------------------------------------------------------------
def make_forward(input_nc, output_nc, ngf, n_blocks):
    del input_nc, n_blocks  # static architecture config is implied by the prepped tree

    def forward(prep, inp, inp2):
        """inp: (N, input_nc, H, W) NCHW; inp2: (N, 1, 2H, 2W) NCHW.  Returns NCHW."""
        x = jnp.transpose(inp, (0, 2, 3, 1))    # NHWC
        x2 = jnp.transpose(inp2, (0, 2, 3, 1))  # NHWC

        # downsample_layer: Conv2d(1,1,k=2,s=2); concat through channels
        down = conv2d(x2, prep["down"], kh=2, kw=2, cout=1, stride=2)
        cat = jnp.concatenate([x, down], axis=-1)

        # encoder (self.model)
        h = conv2d(cat, prep["enc0"], kh=7, kw=7, cout=ngf, padding=3,
                   pad_mode="reflect", activation="relu")
        h = conv2d(h, prep["down1"], kh=3, kw=3, cout=2 * ngf, stride=2, padding=1,
                   activation="relu")
        h = conv2d(h, prep["down2"], kh=3, kw=3, cout=4 * ngf, stride=2, padding=1,
                   activation="relu")

        # ResNet blocks — skip connection fused into the 2nd conv's kernel epilogue
        for blk in prep["resblocks"]:
            r = conv2d(h, blk["c1"], kh=3, kw=3, cout=4 * ngf, padding=1,
                       pad_mode="reflect", activation="relu")
            h = conv2d(r, blk["c2"], kh=3, kw=3, cout=4 * ngf, padding=1,
                       pad_mode="reflect", activation="none", residual=h)

        # decoder (self.model1)
        h = conv_transpose2d(h, prep["up1"], cout=2 * ngf, activation="relu")
        h = conv_transpose2d(h, prep["up2"], cout=ngf, activation="relu")
        out = conv2d(h, prep["final"], kh=7, kw=7, cout=output_nc, padding=3,
                     pad_mode="reflect", activation="tanh")
        return jnp.transpose(out, (0, 3, 1, 2))  # back to NCHW

    return forward


if __name__ == "__main__":
    N, input_nc, output_nc, ngf, n_blocks = 2, 1, 1, 8, 2
    H = W = 16

    raw = init_params(jax.random.PRNGKey(0), input_nc, output_nc, ngf, n_blocks)
    prep = prepare_params(raw)   # one-time weight prep (BN fold, pad, bf16 cast)

    k1, k2 = jax.random.split(jax.random.PRNGKey(0), 2)
    inp = jax.random.normal(k1, (N, input_nc, H, W), jnp.float32)
    inp2 = jax.random.normal(k2, (N, 1, 2 * H, 2 * W), jnp.float32)

    fwd = jax.jit(make_forward(input_nc, output_nc, ngf, n_blocks))
    out = jax.block_until_ready(fwd(prep, inp, inp2))

    assert out.shape == (N, output_nc, H, W), out.shape
    assert bool(jnp.all(jnp.isfinite(out)))
    assert bool(jnp.all(jnp.abs(out) <= 1.0 + 1e-6))  # tanh range
    print("KERNEL_OK")
</pallas_src>

<mosaic_0001>
module attributes {stable_mosaic.version = 11 : i64} {
  func.func @_fused_matmul_kernel(%arg0: i32, %arg1: i32, %arg2: memref<256x128xbf16, #tpu.memory_space<vmem>>, %arg3: memref<128x128xbf16, #tpu.memory_space<vmem>>, %arg4: memref<1x128xf32, #tpu.memory_space<vmem>>, %arg5: memref<256x128xf32, #tpu.memory_space<vmem>>) attributes {dimension_semantics = [#tpu.dimension_semantics<parallel>, #tpu.dimension_semantics<parallel>], iteration_bounds = array<i64: 2, 1>, scalar_prefetch = 0 : i64, scratch_operands = 0 : i64, tpu.core_type = #tpu.core_type<tc>, window_params = [{transform_indices = @transform_0, window_bounds = array<i64: 256, 128>}, {transform_indices = @transform_1, window_bounds = array<i64: 128, 128>}, {transform_indices = @transform_2, window_bounds = array<i64: 1, 128>}, {transform_indices = @transform_3, window_bounds = array<i64: 256, 128>}]} {
    %c0 = arith.constant 0 : index
    %c0_0 = arith.constant 0 : index
    %0 = vector.load %arg2[%c0, %c0_0] : memref<256x128xbf16, #tpu.memory_space<vmem>>, vector<256x128xbf16>
    %c0_1 = arith.constant 0 : index
    %c0_2 = arith.constant 0 : index
    %1 = vector.load %arg3[%c0_1, %c0_2] : memref<128x128xbf16, #tpu.memory_space<vmem>>, vector<128x128xbf16>
    %cst = arith.constant dense<0.000000e+00> : vector<256x128xf32>
    %2 = tpu.matmul %0, %1, %cst {dimension_numbers = #tpu.dot_dimension_numbers<[1], [0], [0], [1], [0, 0, 1, 1], [], []>} : vector<256x128xbf16>, vector<128x128xbf16>, vector<256x128xf32> -> vector<256x128xf32>
    %c0_3 = arith.constant 0 : index
    %c0_4 = arith.constant 0 : index
    %3 = vector.load %arg4[%c0_3, %c0_4] : memref<1x128xf32, #tpu.memory_space<vmem>>, vector<1x128xf32>
    %4 = vector.broadcast %3 : vector<1x128xf32> to vector<256x128xf32>
    %5 = arith.addf %2, %4 : vector<256x128xf32>
    %c0_5 = arith.constant 0 : index
    %c0_6 = arith.constant 0 : index
    %6 = vector.load %arg5[%c0_5, %c0_6] : memref<256x128xf32, #tpu.memory_space<vmem>>, vector<256x128xf32>
    tpu.vector_store %arg5[%c0_5, %c0_6], %5 {strides = array<i32>} : memref<256x128xf32, #tpu.memory_space<vmem>>, vector<256x128xf32>,
    return
  }
  func.func @transform_0(%arg0: i32, %arg1: i32) -> (i32, i32) {
    %c0_i32 = arith.constant 0 : i32
    %c0_i32_0 = arith.constant 0 : i32
    return %arg0, %c0_i32 : i32, i32
  }
  func.func @transform_1(%arg0: i32, %arg1: i32) -> (i32, i32) {
    %c0_i32 = arith.constant 0 : i32
    %c0_i32_0 = arith.constant 0 : i32
    return %c0_i32, %arg1 : i32, i32
  }
  func.func @transform_2(%arg0: i32, %arg1: i32) -> (i32, i32) {
    %c0_i32 = arith.constant 0 : i32
    %c0_i32_0 = arith.constant 0 : i32
    return %c0_i32, %arg1 : i32, i32
  }
  func.func @transform_3(%arg0: i32, %arg1: i32) -> (i32, i32) {
    %c0_i32 = arith.constant 0 : i32
    return %arg0, %arg1 : i32, i32
  }
}

module attributes {stable_mosaic.version = 11 : i64} {
  func.func @_fused_matmul_kernel(%arg0: i32, %arg1: i32, %arg2: memref<256x128xbf16, #tpu.memory_space<vmem>>, %arg3: memref<128x128xbf16, #tpu.memory_space<vmem>>, %arg4: memref<1x128xf32, #tpu.memory_space<vmem>>, %arg5: memref<256x128xf32, #tpu.memory_space<vmem>>) attributes {dimension_semantics = [#tpu.dimension_semantics<parallel>, #tpu.dimension_semantics<parallel>], iteration_bounds = array<i64: 2, 1>, scalar_prefetch = 0 : i64, scratch_operands = 0 : i64, tpu.core_type = #tpu.core_type<tc>, window_params = [{transform_indices = @transform_0, window_bounds = array<i64: 256, 128>}, {transform_indices = @transform_1, window_bounds = array<i64: 128, 128>}, {transform_indices = @transform_2, window_bounds = array<i64: 1, 128>}, {transform_indices = @transform_3, window_bounds = array<i64: 256, 128>}]} {
    %c0 = arith.constant 0 : index
    %c0_0 = arith.constant 0 : index
    %0 = vector.load %arg2[%c0, %c0_0] : memref<256x128xbf16, #tpu.memory_space<vmem>>, vector<256x128xbf16>
    %c0_1 = arith.constant 0 : index
    %c0_2 = arith.constant 0 : index
    %1 = vector.load %arg3[%c0_1, %c0_2] : memref<128x128xbf16, #tpu.memory_space<vmem>>, vector<128x128xbf16>
    %cst = arith.constant dense<0.000000e+00> : vector<256x128xf32>
    %2 = tpu.matmul %0, %1, %cst {dimension_numbers = #tpu.dot_dimension_numbers<[1], [0], [0], [1], [0, 0, 1, 1], [], []>} : vector<256x128xbf16>, vector<128x128xbf16>, vector<256x128xf32> -> vector<256x128xf32>
    %c0_3 = arith.constant 0 : index
    %c0_4 = arith.constant 0 : index
    %3 = vector.load %arg4[%c0_3, %c0_4] : memref<1x128xf32, #tpu.memory_space<vmem>>, vector<1x128xf32>
    %4 = vector.broadcast %3 : vector<1x128xf32> to vector<256x128xf32>
    %5 = arith.addf %2, %4 : vector<256x128xf32>
    %cst_5 = arith.constant 0.000000e+00 : f32
    %6 = vector.broadcast %cst_5 : f32 to vector<256x128xf32>
    %7 = arith.maximumf %5, %6 : vector<256x128xf32>
    %c0_6 = arith.constant 0 : index
    %c0_7 = arith.constant 0 : index
    %8 = vector.load %arg5[%c0_6, %c0_7] : memref<256x128xf32, #tpu.memory_space<vmem>>, vector<256x128xf32>
    tpu.vector_store %arg5[%c0_6, %c0_7], %7 {strides = array<i32>} : memref<256x128xf32, #tpu.memory_space<vmem>>, vector<256x128xf32>,
    return
  }
  func.func @transform_0(%arg0: i32, %arg1: i32) -> (i32, i32) {
    %c0_i32 = arith.constant 0 : i32
    %c0_i32_0 = arith.constant 0 : i32
    return %arg0, %c0_i32 : i32, i32
  }
  func.func @transform_1(%arg0: i32, %arg1: i32) -> (i32, i32) {
    %c0_i32 = arith.constant 0 : i32
    %c0_i32_0 = arith.constant 0 : i32
    return %c0_i32, %arg1 : i32, i32
  }
  func.func @transform_2(%arg0: i32, %arg1: i32) -> (i32, i32) {
    %c0_i32 = arith.constant 0 : i32
    %c0_i32_0 = arith.constant 0 : i32
    return %c0_i32, %arg1 : i32, i32
  }
  func.func @transform_3(%arg0: i32, %arg1: i32) -> (i32, i32) {
    %c0_i32 = arith.constant 0 : i32
    return %arg0, %arg1 : i32, i32
  }
}

module attributes {stable_mosaic.version = 11 : i64} {
  func.func @_fused_matmul_kernel(%arg0: i32, %arg1: i32, %arg2: memref<128x128xbf16, #tpu.memory_space<vmem>>, %arg3: memref<128x128xbf16, #tpu.memory_space<vmem>>, %arg4: memref<1x128xf32, #tpu.memory_space<vmem>>, %arg5: memref<128x128xf32, #tpu.memory_space<vmem>>) attributes {dimension_semantics = [#tpu.dimension_semantics<parallel>, #tpu.dimension_semantics<parallel>], iteration_bounds = array<i64: 1, 1>, scalar_prefetch = 0 : i64, scratch_operands = 0 : i64, tpu.core_type = #tpu.core_type<tc>, window_params = [{transform_indices = @transform_0, window_bounds = array<i64: 128, 128>}, {transform_indices = @transform_1, window_bounds = array<i64: 128, 128>}, {transform_indices = @transform_2, window_bounds = array<i64: 1, 128>}, {transform_indices = @transform_3, window_bounds = array<i64: 128, 128>}]} {
    %c0 = arith.constant 0 : index
    %c0_0 = arith.constant 0 : index
    %0 = vector.load %arg2[%c0, %c0_0] : memref<128x128xbf16, #tpu.memory_space<vmem>>, vector<128x128xbf16>
    %c0_1 = arith.constant 0 : index
    %c0_2 = arith.constant 0 : index
    %1 = vector.load %arg3[%c0_1, %c0_2] : memref<128x128xbf16, #tpu.memory_space<vmem>>, vector<128x128xbf16>
    %cst = arith.constant dense<0.000000e+00> : vector<128x128xf32>
    %2 = tpu.matmul %0, %1, %cst {dimension_numbers = #tpu.dot_dimension_numbers<[1], [0], [0], [1], [0, 0, 1, 1], [], []>} : vector<128x128xbf16>, vector<128x128xbf16>, vector<128x128xf32> -> vector<128x128xf32>
    %c0_3 = arith.constant 0 : index
    %c0_4 = arith.constant 0 : index
    %3 = vector.load %arg4[%c0_3, %c0_4] : memref<1x128xf32, #tpu.memory_space<vmem>>, vector<1x128xf32>
    %4 = vector.broadcast %3 : vector<1x128xf32> to vector<128x128xf32>
    %5 = arith.addf %2, %4 : vector<128x128xf32>
    %cst_5 = arith.constant 0.000000e+00 : f32
    %6 = vector.broadcast %cst_5 : f32 to vector<128x128xf32>
    %7 = arith.maximumf %5, %6 : vector<128x128xf32>
    %c0_6 = arith.constant 0 : index
    %c0_7 = arith.constant 0 : index
    %8 = vector.load %arg5[%c0_6, %c0_7] : memref<128x128xf32, #tpu.memory_space<vmem>>, vector<128x128xf32>
    tpu.vector_store %arg5[%c0_6, %c0_7], %7 {strides = array<i32>} : memref<128x128xf32, #tpu.memory_space<vmem>>, vector<128x128xf32>,
    return
  }
  func.func @transform_0(%arg0: i32, %arg1: i32) -> (i32, i32) {
    %c0_i32 = arith.constant 0 : i32
    %c0_i32_0 = arith.constant 0 : i32
    return %arg0, %c0_i32 : i32, i32
  }
  func.func @transform_1(%arg0: i32, %arg1: i32) -> (i32, i32) {
    %c0_i32 = arith.constant 0 : i32
    %c0_i32_0 = arith.constant 0 : i32
    return %c0_i32, %arg1 : i32, i32
  }
  func.func @transform_2(%arg0: i32, %arg1: i32) -> (i32, i32) {
    %c0_i32 = arith.constant 0 : i32
    %c0_i32_0 = arith.constant 0 : i32
    return %c0_i32, %arg1 : i32, i32
  }
  func.func @transform_3(%arg0: i32, %arg1: i32) -> (i32, i32) {
    %c0_i32 = arith.constant 0 : i32
    return %arg0, %arg1 : i32, i32
  }
}

module attributes {stable_mosaic.version = 11 : i64} {
  func.func @_fused_matmul_kernel(%arg0: i32, %arg1: i32, %arg2: memref<32x256xbf16, #tpu.memory_space<vmem>>, %arg3: memref<256x128xbf16, #tpu.memory_space<vmem>>, %arg4: memref<1x128xf32, #tpu.memory_space<vmem>>, %arg5: memref<32x128xf32, #tpu.memory_space<vmem>>) attributes {dimension_semantics = [#tpu.dimension_semantics<parallel>, #tpu.dimension_semantics<parallel>], iteration_bounds = array<i64: 1, 1>, scalar_prefetch = 0 : i64, scratch_operands = 0 : i64, tpu.core_type = #tpu.core_type<tc>, window_params = [{transform_indices = @transform_0, window_bounds = array<i64: 32, 256>}, {transform_indices = @transform_1, window_bounds = array<i64: 256, 128>}, {transform_indices = @transform_2, window_bounds = array<i64: 1, 128>}, {transform_indices = @transform_3, window_bounds = array<i64: 32, 128>}]} {
    %c0 = arith.constant 0 : index
    %c0_0 = arith.constant 0 : index
    %0 = vector.load %arg2[%c0, %c0_0] : memref<32x256xbf16, #tpu.memory_space<vmem>>, vector<32x256xbf16>
    %c0_1 = arith.constant 0 : index
    %c0_2 = arith.constant 0 : index
    %1 = vector.load %arg3[%c0_1, %c0_2] : memref<256x128xbf16, #tpu.memory_space<vmem>>, vector<256x128xbf16>
    %cst = arith.constant dense<0.000000e+00> : vector<32x128xf32>
    %2 = tpu.matmul %0, %1, %cst {dimension_numbers = #tpu.dot_dimension_numbers<[1], [0], [0], [1], [0, 0, 1, 1], [], []>} : vector<32x256xbf16>, vector<256x128xbf16>, vector<32x128xf32> -> vector<32x128xf32>
    %c0_3 = arith.constant 0 : index
    %c0_4 = arith.constant 0 : index
    %3 = vector.load %arg4[%c0_3, %c0_4] : memref<1x128xf32, #tpu.memory_space<vmem>>, vector<1x128xf32>
    %4 = vector.broadcast %3 : vector<1x128xf32> to vector<32x128xf32>
    %5 = arith.addf %2, %4 : vector<32x128xf32>
    %cst_5 = arith.constant 0.000000e+00 : f32
    %6 = vector.broadcast %cst_5 : f32 to vector<32x128xf32>
    %7 = arith.maximumf %5, %6 : vector<32x128xf32>
    %c0_6 = arith.constant 0 : index
    %c0_7 = arith.constant 0 : index
    %8 = vector.load %arg5[%c0_6, %c0_7] : memref<32x128xf32, #tpu.memory_space<vmem>>, vector<32x128xf32>
    tpu.vector_store %arg5[%c0_6, %c0_7], %7 {strides = array<i32>} : memref<32x128xf32, #tpu.memory_space<vmem>>, vector<32x128xf32>,
    return
  }
  func.func @transform_0(%arg0: i32, %arg1: i32) -> (i32, i32) {
    %c0_i32 = arith.constant 0 : i32
    %c0_i32_0 = arith.constant 0 : i32
    return %arg0, %c0_i32 : i32, i32
  }
  func.func @transform_1(%arg0: i32, %arg1: i32) -> (i32, i32) {
    %c0_i32 = arith.constant 0 : i32
    %c0_i32_0 = arith.constant 0 : i32
    return %c0_i32, %arg1 : i32, i32
  }
  func.func @transform_2(%arg0: i32, %arg1: i32) -> (i32, i32) {
    %c0_i32 = arith.constant 0 : i32
    %c0_i32_0 = arith.constant 0 : i32
    return %c0_i32, %arg1 : i32, i32
  }
  func.func @transform_3(%arg0: i32, %arg1: i32) -> (i32, i32) {
    %c0_i32 = arith.constant 0 : i32
    return %arg0, %arg1 : i32, i32
  }
}

module attributes {stable_mosaic.version = 11 : i64} {
  func.func @_fused_matmul_kernel(%arg0: i32, %arg1: i32, %arg2: memref<32x384xbf16, #tpu.memory_space<vmem>>, %arg3: memref<384x128xbf16, #tpu.memory_space<vmem>>, %arg4: memref<1x128xf32, #tpu.memory_space<vmem>>, %arg5: memref<32x128xf32, #tpu.memory_space<vmem>>) attributes {dimension_semantics = [#tpu.dimension_semantics<parallel>, #tpu.dimension_semantics<parallel>], iteration_bounds = array<i64: 1, 1>, scalar_prefetch = 0 : i64, scratch_operands = 0 : i64, tpu.core_type = #tpu.core_type<tc>, window_params = [{transform_indices = @transform_0, window_bounds = array<i64: 32, 384>}, {transform_indices = @transform_1, window_bounds = array<i64: 384, 128>}, {transform_indices = @transform_2, window_bounds = array<i64: 1, 128>}, {transform_indices = @transform_3, window_bounds = array<i64: 32, 128>}]} {
    %c0 = arith.constant 0 : index
    %c0_0 = arith.constant 0 : index
    %0 = vector.load %arg2[%c0, %c0_0] : memref<32x384xbf16, #tpu.memory_space<vmem>>, vector<32x384xbf16>
    %c0_1 = arith.constant 0 : index
    %c0_2 = arith.constant 0 : index
    %1 = vector.load %arg3[%c0_1, %c0_2] : memref<384x128xbf16, #tpu.memory_space<vmem>>, vector<384x128xbf16>
    %cst = arith.constant dense<0.000000e+00> : vector<32x128xf32>
    %2 = tpu.matmul %0, %1, %cst {dimension_numbers = #tpu.dot_dimension_numbers<[1], [0], [0], [1], [0, 0, 1, 1], [], []>} : vector<32x384xbf16>, vector<384x128xbf16>, vector<32x128xf32> -> vector<32x128xf32>
    %c0_3 = arith.constant 0 : index
    %c0_4 = arith.constant 0 : index
    %3 = vector.load %arg4[%c0_3, %c0_4] : memref<1x128xf32, #tpu.memory_space<vmem>>, vector<1x128xf32>
    %4 = vector.broadcast %3 : vector<1x128xf32> to vector<32x128xf32>
    %5 = arith.addf %2, %4 : vector<32x128xf32>
    %cst_5 = arith.constant 0.000000e+00 : f32
    %6 = vector.broadcast %cst_5 : f32 to vector<32x128xf32>
    %7 = arith.maximumf %5, %6 : vector<32x128xf32>
    %c0_6 = arith.constant 0 : index
    %c0_7 = arith.constant 0 : index
    %8 = vector.load %arg5[%c0_6, %c0_7] : memref<32x128xf32, #tpu.memory_space<vmem>>, vector<32x128xf32>
    tpu.vector_store %arg5[%c0_6, %c0_7], %7 {strides = array<i32>} : memref<32x128xf32, #tpu.memory_space<vmem>>, vector<32x128xf32>,
    return
  }
  func.func @transform_0(%arg0: i32, %arg1: i32) -> (i32, i32) {
    %c0_i32 = arith.constant 0 : i32
    %c0_i32_0 = arith.constant 0 : i32
    return %arg0, %c0_i32 : i32, i32
  }
  func.func @transform_1(%arg0: i32, %arg1: i32) -> (i32, i32) {
    %c0_i32 = arith.constant 0 : i32
    %c0_i32_0 = arith.constant 0 : i32
    return %c0_i32, %arg1 : i32, i32
  }
  func.func @transform_2(%arg0: i32, %arg1: i32) -> (i32, i32) {
    %c0_i32 = arith.constant 0 : i32
    %c0_i32_0 = arith.constant 0 : i32
    return %c0_i32, %arg1 : i32, i32
  }
  func.func @transform_3(%arg0: i32, %arg1: i32) -> (i32, i32) {
    %c0_i32 = arith.constant 0 : i32
    return %arg0, %arg1 : i32, i32
  }
}

module attributes {stable_mosaic.version = 11 : i64} {
  func.func @_fused_matmul_kernel(%arg0: i32, %arg1: i32, %arg2: memref<32x384xbf16, #tpu.memory_space<vmem>>, %arg3: memref<384x128xbf16, #tpu.memory_space<vmem>>, %arg4: memref<1x128xf32, #tpu.memory_space<vmem>>, %arg5: memref<32x128xf32, #tpu.memory_space<vmem>>, %arg6: memref<32x128xf32, #tpu.memory_space<vmem>>) attributes {dimension_semantics = [#tpu.dimension_semantics<parallel>, #tpu.dimension_semantics<parallel>], iteration_bounds = array<i64: 1, 1>, scalar_prefetch = 0 : i64, scratch_operands = 0 : i64, tpu.core_type = #tpu.core_type<tc>, window_params = [{transform_indices = @transform_0, window_bounds = array<i64: 32, 384>}, {transform_indices = @transform_1, window_bounds = array<i64: 384, 128>}, {transform_indices = @transform_2, window_bounds = array<i64: 1, 128>}, {transform_indices = @transform_3, window_bounds = array<i64: 32, 128>}, {transform_indices = @transform_4, window_bounds = array<i64: 32, 128>}]} {
    %c0 = arith.constant 0 : index
    %c0_0 = arith.constant 0 : index
    %0 = vector.load %arg2[%c0, %c0_0] : memref<32x384xbf16, #tpu.memory_space<vmem>>, vector<32x384xbf16>
    %c0_1 = arith.constant 0 : index
    %c0_2 = arith.constant 0 : index
    %1 = vector.load %arg3[%c0_1, %c0_2] : memref<384x128xbf16, #tpu.memory_space<vmem>>, vector<384x128xbf16>
    %cst = arith.constant dense<0.000000e+00> : vector<32x128xf32>
    %2 = tpu.matmul %0, %1, %cst {dimension_numbers = #tpu.dot_dimension_numbers<[1], [0], [0], [1], [0, 0, 1, 1], [], []>} : vector<32x384xbf16>, vector<384x128xbf16>, vector<32x128xf32> -> vector<32x128xf32>
    %c0_3 = arith.constant 0 : index
    %c0_4 = arith.constant 0 : index
    %3 = vector.load %arg4[%c0_3, %c0_4] : memref<1x128xf32, #tpu.memory_space<vmem>>, vector<1x128xf32>
    %4 = vector.broadcast %3 : vector<1x128xf32> to vector<32x128xf32>
    %5 = arith.addf %2, %4 : vector<32x128xf32>
    %c0_5 = arith.constant 0 : index
    %c0_6 = arith.constant 0 : index
    %6 = vector.load %arg5[%c0_5, %c0_6] : memref<32x128xf32, #tpu.memory_space<vmem>>, vector<32x128xf32>
    %7 = arith.addf %5, %6 : vector<32x128xf32>
    %c0_7 = arith.constant 0 : index
    %c0_8 = arith.constant 0 : index
    %8 = vector.load %arg6[%c0_7, %c0_8] : memref<32x128xf32, #tpu.memory_space<vmem>>, vector<32x128xf32>
    tpu.vector_store %arg6[%c0_7, %c0_8], %7 {strides = array<i32>} : memref<32x128xf32, #tpu.memory_space<vmem>>, vector<32x128xf32>,
    return
  }
  func.func @transform_0(%arg0: i32, %arg1: i32) -> (i32, i32) {
    %c0_i32 = arith.constant 0 : i32
    %c0_i32_0 = arith.constant 0 : i32
    return %arg0, %c0_i32 : i32, i32
  }
  func.func @transform_1(%arg0: i32, %arg1: i32) -> (i32, i32) {
    %c0_i32 = arith.constant 0 : i32
    %c0_i32_0 = arith.constant 0 : i32
    return %c0_i32, %arg1 : i32, i32
  }
  func.func @transform_2(%arg0: i32, %arg1: i32) -> (i32, i32) {
    %c0_i32 = arith.constant 0 : i32
    %c0_i32_0 = arith.constant 0 : i32
    return %c0_i32, %arg1 : i32, i32
  }
  func.func @transform_3(%arg0: i32, %arg1: i32) -> (i32, i32) {
    %c0_i32 = arith.constant 0 : i32
    return %arg0, %arg1 : i32, i32
  }
  func.func @transform_4(%arg0: i32, %arg1: i32) -> (i32, i32) {
    %c0_i32 = arith.constant 0 : i32
    return %arg0, %arg1 : i32, i32
  }
}

module attributes {stable_mosaic.version = 11 : i64} {
  func.func @_fused_matmul_kernel(%arg0: i32, %arg1: i32, %arg2: memref<32x128xbf16, #tpu.memory_space<vmem>>, %arg3: memref<128x128xbf16, #tpu.memory_space<vmem>>, %arg4: memref<1x128xf32, #tpu.memory_space<vmem>>, %arg5: memref<32x128xf32, #tpu.memory_space<vmem>>) attributes {dimension_semantics = [#tpu.dimension_semantics<parallel>, #tpu.dimension_semantics<parallel>], iteration_bounds = array<i64: 1, 1>, scalar_prefetch = 0 : i64, scratch_operands = 0 : i64, tpu.core_type = #tpu.core_type<tc>, window_params = [{transform_indices = @transform_0, window_bounds = array<i64: 32, 128>}, {transform_indices = @transform_1, window_bounds = array<i64: 128, 128>}, {transform_indices = @transform_2, window_bounds = array<i64: 1, 128>}, {transform_indices = @transform_3, window_bounds = array<i64: 32, 128>}]} {
    %c0 = arith.constant 0 : index
    %c0_0 = arith.constant 0 : index
    %0 = vector.load %arg2[%c0, %c0_0] : memref<32x128xbf16, #tpu.memory_space<vmem>>, vector<32x128xbf16>
    %c0_1 = arith.constant 0 : index
    %c0_2 = arith.constant 0 : index
    %1 = vector.load %arg3[%c0_1, %c0_2] : memref<128x128xbf16, #tpu.memory_space<vmem>>, vector<128x128xbf16>
    %cst = arith.constant dense<0.000000e+00> : vector<32x128xf32>
    %2 = tpu.matmul %0, %1, %cst {dimension_numbers = #tpu.dot_dimension_numbers<[1], [0], [0], [1], [0, 0, 1, 1], [], []>} : vector<32x128xbf16>, vector<128x128xbf16>, vector<32x128xf32> -> vector<32x128xf32>
    %c0_3 = arith.constant 0 : index
    %c0_4 = arith.constant 0 : index
    %3 = vector.load %arg4[%c0_3, %c0_4] : memref<1x128xf32, #tpu.memory_space<vmem>>, vector<1x128xf32>
    %4 = vector.broadcast %3 : vector<1x128xf32> to vector<32x128xf32>
    %5 = arith.addf %2, %4 : vector<32x128xf32>
    %cst_5 = arith.constant 0.000000e+00 : f32
    %6 = vector.broadcast %cst_5 : f32 to vector<32x128xf32>
    %7 = arith.maximumf %5, %6 : vector<32x128xf32>
    %c0_6 = arith.constant 0 : index
    %c0_7 = arith.constant 0 : index
    %8 = vector.load %arg5[%c0_6, %c0_7] : memref<32x128xf32, #tpu.memory_space<vmem>>, vector<32x128xf32>
    tpu.vector_store %arg5[%c0_6, %c0_7], %7 {strides = array<i32>} : memref<32x128xf32, #tpu.memory_space<vmem>>, vector<32x128xf32>,
    return
  }
  func.func @transform_0(%arg0: i32, %arg1: i32) -> (i32, i32) {
    %c0_i32 = arith.constant 0 : i32
    %c0_i32_0 = arith.constant 0 : i32
    return %arg0, %c0_i32 : i32, i32
  }
  func.func @transform_1(%arg0: i32, %arg1: i32) -> (i32, i32) {
    %c0_i32 = arith.constant 0 : i32
    %c0_i32_0 = arith.constant 0 : i32
    return %c0_i32, %arg1 : i32, i32
  }
  func.func @transform_2(%arg0: i32, %arg1: i32) -> (i32, i32) {
    %c0_i32 = arith.constant 0 : i32
    %c0_i32_0 = arith.constant 0 : i32
    return %c0_i32, %arg1 : i32, i32
  }
  func.func @transform_3(%arg0: i32, %arg1: i32) -> (i32, i32) {
    %c0_i32 = arith.constant 0 : i32
    return %arg0, %arg1 : i32, i32
  }
}

module attributes {stable_mosaic.version = 11 : i64} {
  func.func @_fused_matmul_kernel(%arg0: i32, %arg1: i32, %arg2: memref<256x512xbf16, #tpu.memory_space<vmem>>, %arg3: memref<512x128xbf16, #tpu.memory_space<vmem>>, %arg4: memref<1x128xf32, #tpu.memory_space<vmem>>, %arg5: memref<256x128xf32, #tpu.memory_space<vmem>>) attributes {dimension_semantics = [#tpu.dimension_semantics<parallel>, #tpu.dimension_semantics<parallel>], iteration_bounds = array<i64: 2, 1>, scalar_prefetch = 0 : i64, scratch_operands = 0 : i64, tpu.core_type = #tpu.core_type<tc>, window_params = [{transform_indices = @transform_0, window_bounds = array<i64: 256, 512>}, {transform_indices = @transform_1, window_bounds = array<i64: 512, 128>}, {transform_indices = @transform_2, window_bounds = array<i64: 1, 128>}, {transform_indices = @transform_3, window_bounds = array<i64: 256, 128>}]} {
    %c0 = arith.constant 0 : index
    %c0_0 = arith.constant 0 : index
    %0 = vector.load %arg2[%c0, %c0_0] : memref<256x512xbf16, #tpu.memory_space<vmem>>, vector<256x512xbf16>
    %c0_1 = arith.constant 0 : index
    %c0_2 = arith.constant 0 : index
    %1 = vector.load %arg3[%c0_1, %c0_2] : memref<512x128xbf16, #tpu.memory_space<vmem>>, vector<512x128xbf16>
    %cst = arith.constant dense<0.000000e+00> : vector<256x128xf32>
    %2 = tpu.matmul %0, %1, %cst {dimension_numbers = #tpu.dot_dimension_numbers<[1], [0], [0], [1], [0, 0, 1, 1], [], []>} : vector<256x512xbf16>, vector<512x128xbf16>, vector<256x128xf32> -> vector<256x128xf32>
    %c0_3 = arith.constant 0 : index
    %c0_4 = arith.constant 0 : index
    %3 = vector.load %arg4[%c0_3, %c0_4] : memref<1x128xf32, #tpu.memory_space<vmem>>, vector<1x128xf32>
    %4 = vector.broadcast %3 : vector<1x128xf32> to vector<256x128xf32>
    %5 = arith.addf %2, %4 : vector<256x128xf32>
    %6 = math.tanh %5 : vector<256x128xf32>
    %c0_5 = arith.constant 0 : index
    %c0_6 = arith.constant 0 : index
    %7 = vector.load %arg5[%c0_5, %c0_6] : memref<256x128xf32, #tpu.memory_space<vmem>>, vector<256x128xf32>
    tpu.vector_store %arg5[%c0_5, %c0_6], %6 {strides = array<i32>} : memref<256x128xf32, #tpu.memory_space<vmem>>, vector<256x128xf32>,
    return
  }
  func.func @transform_0(%arg0: i32, %arg1: i32) -> (i32, i32) {
    %c0_i32 = arith.constant 0 : i32
    %c0_i32_0 = arith.constant 0 : i32
    return %arg0, %c0_i32 : i32, i32
  }
  func.func @transform_1(%arg0: i32, %arg1: i32) -> (i32, i32) {
    %c0_i32 = arith.constant 0 : i32
    %c0_i32_0 = arith.constant 0 : i32
    return %c0_i32, %arg1 : i32, i32
  }
  func.func @transform_2(%arg0: i32, %arg1: i32) -> (i32, i32) {
    %c0_i32 = arith.constant 0 : i32
    %c0_i32_0 = arith.constant 0 : i32
    return %c0_i32, %arg1 : i32, i32
  }
  func.func @transform_3(%arg0: i32, %arg1: i32) -> (i32, i32) {
    %c0_i32 = arith.constant 0 : i32
    return %arg0, %arg1 : i32, i32
  }
}

</mosaic_0001>

<bundles_post_ra>
// kernel: forward.11
= control target key start
LH: loop header
LB: loop body
LE: loop exit
PB: predicated region body
PF: predicated region fallthrough
CT: control target
= control target key end

     0   :  { %8 = vsyncpa [#allocation3], 0  ;;  %s1244_s0 = inlined_call_operand.vmem [shape: bf16[512,128], index: 0, kind: input, shape index: {}]   ;;  %s1245_s1 = inlined_call_operand.hbm [shape: bf16[128,128], index: 1, kind: input, shape index: {}]   ;;  %s1246_s2 = inlined_call_operand.hbm [shape: f32[1,128], index: 2, kind: input, shape index: {}]   ;;  %s1247_s3 = inlined_call_operand.vmem [shape: f32[512,128], index: 3, kind: output, shape index: {}]  }
   0x1   :  { %9 = vsyncpa [#allocation5], 0  ;;  %s1041_s12 = smov 0   ;;  %s1043_s13 = smov 0  }
   0x2   :  { %s1045_s14 = smov 0  }
   0x3 LB: > { %s730_s15 = sadd.s32 4294967295, %s1015_s14   ;;  %s27_s16 = sadd.s32 1, %s1011_s13  ;;  %s1015_s14 = sphi %s1045_s14, %s15_s14   ;;  %s1011_s13 = sphi %s1043_s13, %s1257_s13   ;;  %s1007_s12 = sphi %s1041_s12, %s1256_s12  }
   0x4   : > { %p29_p0 = scmp.ge.s32.totalorder %s27_s16, 2  ;;  %p732_p1 = scmp.ge.s32.totalorder %s1015_s14, 1 }
   0x5   : > { %p138_p2 = scmp.lt.s32.totalorder %s1015_s14, 3  ;;  %p1066_p4 = scmp.eq.s32.totalorder %s730_s15, 0 }
   0x6   : > { %s1259_s16 = smov (%p29_p0, %s27_s16), 0  ;;  %s1017_s19 = smov [#allocation2]  }
   0x7   : > { %p1062_p3 = pnand %p732_p1, %p138_p2  ;;  %s152_s20 = sshll.u32 %s1017_s19, 4  ;;  %s153_s20 = int_to_ptr.vmem [resolvable:$true] %s152_s20 }
   0x8   : > { %s1252_s18 = scalar_select %p1066_p4, 1, 0 }
   0x9   : > { %s1251_s17 = scalar_select %p1062_p3, 1, 0 }
   0xa   : > { %p866_p5 = pneg %p1062_p3  ;;  %s1018_s22 = smov [#allocation4]  }
   0xb   : > { %s168_s23 = sshll.u32 %s1018_s22, 4  ;;  %s929_s26 = scalar_lea.hbm %s1245_s1, 1024  ;;  %s1078_s23 = int_to_ptr.vmem [resolvable:$true] %s168_s23 }
   0xc   : > { %p1074_p6 = pnand %p1066_p4, %p866_p5  ;;  %p930_p7 = scmp.ne.s32.totalorder %s1245_s1, %s929_s26 }
   0xd   : > { %p936_p11 = scmp.lt.u32.totalorder %s929_s26, %s1245_s1 }
   0xe   : > { %p931_p8 = pneg %p1074_p6 }
  0x10   : > { %p932_p9 = pnand %p931_p8, %p930_p7 }
  0x12   : > { %p933_p10 = pneg %p932_p9 }
  0x14   : > { %p938_p12 = pnand %p936_p11, %p933_p10 }
  0x16   : > { %941 = shalt.err (!%p938_p12)
}
  0x17   : > { %s942_s4 = scalar_lea.vmem %s153_s20, 1024  ;;  %p950_p2 = scmp.lt.s32.totalorder %s153_s20, %s153_s20 }
  0x18   : > { %p943_p13 = scmp.ne.s32.totalorder %s153_s20, %s942_s4  ;;  %p951_p5 = scmp.lt.s32.totalorder %s942_s4, %s942_s4 }
  0x1a   : > { %p945_p0 = pnand %p943_p13, %p931_p8  ;;  %p952_p4 = por %p951_p5, %p950_p2 }
  0x1c   : > { %p946_p1 = pneg %p945_p0 }
  0x1e   : > { %p953_p3 = pnand %p952_p4, %p946_p1 }
  0x20   : > { %956 = shalt.err (!%p953_p3)
}
  0x21   : > { %s1019_s5 = smov 64   ;;  %s1020_s6 = smov 4  }
  0x22   : > { %869 = dma.hbm_to_vmem [thread:$0]  (!%p1074_p6), %s1245_s1, 1024, %s153_s20, [#allocation3], %s1019_s5, %s1019_s5, %s1020_s6  }
  0x23   : > { %s957_s11 = scalar_lea.hbm %s1246_s2, 16 }
  0x24   : > { %p958_p7 = scmp.ne.s32.totalorder %s1246_s2, %s957_s11  ;;  %p964_p9 = scmp.lt.u32.totalorder %s957_s11, %s1246_s2 }
  0x26   : > { %p960_p3 = pnand %p958_p7, %p931_p8 }
  0x28   : > { %p961_p4 = pneg %p960_p3 }
  0x2a   : > { %p966_p10 = pnand %p964_p9, %p961_p4 }
  0x2c   : > { %969 = shalt.err (!%p966_p10)
}
  0x2d   : > { %s970_s20 = scalar_lea.vmem %s1078_s23, 16  ;;  %s977_s25 = scalar_lea.vmem %s1078_s23, 32 }
  0x2e   : > { %p971_p11 = scmp.ne.s32.totalorder %s1078_s23, %s970_s20  ;;  %p978_p0 = scmp.lt.s32.totalorder %s1078_s23, %s1078_s23 }
  0x2f   : > { %p979_p1 = scmp.lt.s32.totalorder %s977_s25, %s970_s20 }
  0x30   : > { %p973_p12 = pnand %p971_p11, %p931_p8 }
  0x31   : > { %p980_p2 = por %p979_p1, %p978_p0 }
  0x32   : > { %p974_p13 = pneg %p973_p12 }
  0x34   : > { %p981_p5 = pnand %p980_p2, %p974_p13 }
  0x36   : > { %984 = shalt.err (!%p981_p5)
}
  0x37   : > { %872 = dma.hbm_to_vmem [thread:$0]  (!%p1074_p6), %s1246_s2, 16, %s1078_s23, [#allocation5]  }
  0x38   : > { %p1254_p7 = scmp.ne.s32.totalorder %s1251_s17, 0 }
  0x39   : > { %p1255_p8 = scmp.ne.s32.totalorder (!%p1254_p7), %s1252_s18, 0 }
  0x3a   : > { %190 = sbr.rel (%p1254_p7) target bundleno = 343 (0x157), region = 32 }
  0x41   : > { %998 = dma.done.wait (%p1255_p8), [#allocation3], 1024  }
  0x42   : > { %1000 = vsyncadd (%p1255_p8), [#allocation3], 4294966272 }
  0x43   : > { %1002 = dma.done.wait (%p1255_p8), [#allocation5], 16  }
  0x44   : > { %1004 = vsyncadd (%p1255_p8), [#allocation5], 4294967280  ;;  %s739_s21 = sshll.u32 %s1007_s12, 5  ;;  %v905_v0 = vld [vmem:[#allocation2] sm:$0xff]   ;;  %v906_v1 = vld [vmem:[#allocation2 + $0x8] sm:$0xff]  }
  0x45   : > { %p222_p3 = scmp.lt.s32.totalorder %s739_s21, 63  ;;  %794 = vmatprep.subr.bf16.mxu0 %v905_v0  ;;  %842 = vmatprep.subr.bf16.mxu1 %v905_v0  ;;  %v907_v2 = vld [vmem:[#allocation2 + $0x10] sm:$0xff]   ;;  %v908_v3 = vld [vmem:[#allocation2 + $0x18] sm:$0xff]   ;;  %v909_v6 = vld [vmem:[#allocation2 + $0x20] sm:$0xff]  }
  0x46   : > { %795 = vmatpush3.bf16.msra.mxu0 %v905_v0  ;;  %850 = vmatpush3.bf16.msra.mxu1 %v905_v0  ;;  %v910_v7 = vld [vmem:[#allocation2 + $0x28] sm:$0xff]   ;;  %v911_v8 = vld [vmem:[#allocation2 + $0x30] sm:$0xff]   ;;  %v912_v9 = vld [vmem:[#allocation2 + $0x38] sm:$0xff]  }
  0x47   : > { %s1261_s21 = smov (!%p222_p3, %s739_s21), 63  ;;  %796 = vmatprep.subr.bf16.mxu0 %v906_v1  ;;  %843 = vmatprep.subr.bf16.mxu1 %v906_v1  ;;  %v1164_v24 = vld [vmem:[#allocation4] ss:$0 sm:$0xff] }
  0x48   : > { %s740_s17 = sshll.u32 %s1261_s21, 2  ;;  %s742_s12 = sshll.u32 %s1261_s21, 3 }
  0x49   : > { %s1145_s18 = scalar_lea.vmem %s1244_s0, %s740_s17  ;;  %s1169_s4 = scalar_lea.vmem %s1247_s3, %s742_s12 }
  0x4a   : > { %797 = vmatpush3.bf16.msra.mxu0 %v906_v1  ;;  %851 = vmatpush3.bf16.msra.mxu1 %v906_v1  ;;  %v913_v4 = vld [vmem:[%s1145_s18] sm:$0xff]   ;;  %v915_v10 = vld [vmem:[%s1145_s18 + $0x8] sm:$0xff]   ;;  %v917_v12 = vld [vmem:[%s1145_s18 + $0x10] sm:$0xff]  }
  0x4b   : > { %798 = vmatprep.subr.bf16.mxu0 %v907_v2  ;;  %844 = vmatprep.subr.bf16.mxu1 %v907_v2  ;;  %v914_v5 = vld [vmem:[%s1145_s18 + $0x40] sm:$0xff]   ;;  %v916_v11 = vld [vmem:[%s1145_s18 + $0x48] sm:$0xff]   ;;  %v918_v13 = vld [vmem:[%s1145_s18 + $0x50] sm:$0xff]  }
  0x4c   : > { %810 = vmatprep.mubr.bf16.mxu0 %v913_v4  ;;  %826 = vmatprep.mubr.bf16.mxu1 %v914_v5  ;;  %v919_v14 = vld [vmem:[%s1145_s18 + $0x18] sm:$0xff]   ;;  %v921_v16 = vld [vmem:[%s1145_s18 + $0x20] sm:$0xff]   ;;  %v923_v18 = vld [vmem:[%s1145_s18 + $0x28] sm:$0xff]  }
  0x4d   : > { %v920_v15 = vld [vmem:[%s1145_s18 + $0x58] sm:$0xff]   ;;  %v922_v17 = vld [vmem:[%s1145_s18 + $0x60] sm:$0xff]   ;;  %v924_v19 = vld [vmem:[%s1145_s18 + $0x68] sm:$0xff]  }
  0x4e   : > { %799 = vmatpush3.bf16.msra.mxu0 %v907_v2  ;;  %852 = vmatpush3.bf16.msra.mxu1 %v907_v2  ;;  %v925_v20 = vld [vmem:[%s1145_s18 + $0x30] sm:$0xff]   ;;  %v927_v22 = vld [vmem:[%s1145_s18 + $0x38] sm:$0xff]  }
  0x4f   : > { %800 = vmatprep.subr.bf16.mxu0 %v908_v3  ;;  %845 = vmatprep.subr.bf16.mxu1 %v908_v3  ;;  %v926_v21 = vld [vmem:[%s1145_s18 + $0x70] sm:$0xff]   ;;  %v928_v23 = vld [vmem:[%s1145_s18 + $0x78] sm:$0xff]  }
  0x52   : > { %801 = vmatpush3.bf16.msra.mxu0 %v908_v3  ;;  %853 = vmatpush3.bf16.msra.mxu1 %v908_v3 }
  0x53   : > { %802 = vmatprep.subr.bf16.mxu0 %v909_v6  ;;  %846 = vmatprep.subr.bf16.mxu1 %v909_v6 }
  0x56   : > { %803 = vmatpush3.bf16.msra.mxu0 %v909_v6  ;;  %854 = vmatpush3.bf16.msra.mxu1 %v909_v6 }
  0x57   : > { %804 = vmatprep.subr.bf16.mxu0 %v910_v7  ;;  %847 = vmatprep.subr.bf16.mxu1 %v910_v7 }
  0x5a   : > { %805 = vmatpush3.bf16.msra.mxu0 %v910_v7  ;;  %855 = vmatpush3.bf16.msra.mxu1 %v910_v7 }
  0x5b   : > { %806 = vmatprep.subr.bf16.mxu0 %v911_v8  ;;  %848 = vmatprep.subr.bf16.mxu1 %v911_v8 }
  0x5e   : > { %807 = vmatpush3.bf16.msra.mxu0 %v911_v8  ;;  %856 = vmatpush3.bf16.msra.mxu1 %v911_v8 }
  0x5f   : > { %808 = vmatprep.subr.bf16.mxu0 %v912_v9  ;;  %849 = vmatprep.subr.bf16.mxu1 %v912_v9 }
  0x62   : > { %809 = vmatpush3.bf16.msra.mxu0 %v912_v9  ;;  %857 = vmatpush3.bf16.msra.mxu1 %v912_v9 }
  0x65   : > { %811 = vmatmul.mubr.bf16.vlgmr.msra.gmra.mrb[0].mxu0 %v915_v10  ;;  %827 = vmatmul.mubr.bf16.vlgmr.msra.gmra.mrb[0].mxu1 %v916_v11 }
  0x66   : > { %814 = vmatprep.mubr.bf16.mxu0 %v917_v12  ;;  %830 = vmatprep.mubr.bf16.mxu1 %v918_v13 }
  0x6d   : > { %815 = vmatmul.mubr.bf16.gmra.mrb[4].mxu0 %v919_v14  ;;  %831 = vmatmul.mubr.bf16.gmra.mrb[4].mxu1 %v920_v15 }
  0x6e   : > { %818 = vmatprep.mubr.bf16.mxu0 %v921_v16  ;;  %834 = vmatprep.mubr.bf16.mxu1 %v922_v17 }
  0x75   : > { %819 = vmatmul.mubr.bf16.gmra.mrb[8].mxu0 %v923_v18  ;;  %835 = vmatmul.mubr.bf16.gmra.mrb[8].mxu1 %v924_v19 }
  0x76   : > { %822 = vmatprep.mubr.bf16.mxu0 %v925_v20  ;;  %838 = vmatprep.mubr.bf16.mxu1 %v926_v21 }
  0x7d   : > { %823 = vmatmul.mubr.bf16.gmra.mrb[12].mxu0 %v927_v22  ;;  %839 = vmatmul.mubr.bf16.gmra.mrb[12].mxu1 %v928_v23 }
 0x138   : > { %v812_v25 = vpop.f32.mrb[0].mxu0  ;;  %v828_v26 = vpop.f32.mrb[0].mxu1 }
 0x139   : > { %v479_v27 = vadd.f32 %v812_v25, %v1164_v24  ;;  %v543_v28 = vadd.f32 %v828_v26, %v1164_v24  ;;  %v470_v29 = vpop.f32.mrb[1].mxu0  ;;  %v534_v30 = vpop.f32.mrb[1].mxu1 }
 0x13a   : > { %v471_v31 = vadd.f32 %v1164_v24, %v470_v29  ;;  %v535_v32 = vadd.f32 %v1164_v24, %v534_v30  ;;  %v813_v33 = vpop.f32.mrb[2].mxu0  ;;  %v829_v34 = vpop.f32.mrb[2].mxu1 }
 0x13b   : > { %599 = vst [vmem:[%s1169_s4 + $0x10] sm:$0xff] %v479_v27  ;;  %615 = vst [vmem:[%s1169_s4 + $0x90] sm:$0xff] %v543_v28  ;;  %v482_v35 = vadd.f32 %v813_v33, %v1164_v24  ;;  %v546_v36 = vadd.f32 %v829_v34, %v1164_v24  ;;  %v473_v37 = vpop.f32.mrb[3].mxu0  ;;  %v537_v38 = vpop.f32.mrb[3].mxu1 }
 0x13c   : > { %597 = vst [vmem:[%s1169_s4] sm:$0xff] %v471_v31  ;;  %613 = vst [vmem:[%s1169_s4 + $0x80] sm:$0xff] %v535_v32  ;;  %v474_v39 = vadd.f32 %v1164_v24, %v473_v37  ;;  %v538_v40 = vadd.f32 %v1164_v24, %v537_v38 }
 0x13d   : > { %600 = vst [vmem:[%s1169_s4 + $0x18] sm:$0xff] %v482_v35  ;;  %616 = vst [vmem:[%s1169_s4 + $0x98] sm:$0xff] %v546_v36 }
 0x13e   : > { %598 = vst [vmem:[%s1169_s4 + $0x8] sm:$0xff] %v474_v39  ;;  %614 = vst [vmem:[%s1169_s4 + $0x88] sm:$0xff] %v538_v40 }
 0x140   : > { %v816_v41 = vpop.f32.mrb[4].mxu0  ;;  %v832_v42 = vpop.f32.mrb[4].mxu1 }
 0x141   : > { %v495_v43 = vadd.f32 %v816_v41, %v1164_v24  ;;  %v559_v44 = vadd.f32 %v832_v42, %v1164_v24  ;;  %v486_v45 = vpop.f32.mrb[5].mxu0  ;;  %v550_v46 = vpop.f32.mrb[5].mxu1 }
 0x142   : > { %v487_v47 = vadd.f32 %v1164_v24, %v486_v45  ;;  %v551_v48 = vadd.f32 %v1164_v24, %v550_v46  ;;  %v817_v49 = vpop.f32.mrb[6].mxu0  ;;  %v833_v50 = vpop.f32.mrb[6].mxu1 }
 0x143   : > { %603 = vst [vmem:[%s1169_s4 + $0x30] sm:$0xff] %v495_v43  ;;  %619 = vst [vmem:[%s1169_s4 + $0xb0] sm:$0xff] %v559_v44  ;;  %v498_v51 = vadd.f32 %v817_v49, %v1164_v24  ;;  %v562_v52 = vadd.f32 %v833_v50, %v1164_v24  ;;  %v489_v53 = vpop.f32.mrb[7].mxu0  ;;  %v553_v54 = vpop.f32.mrb[7].mxu1 }
 0x144   : > { %601 = vst [vmem:[%s1169_s4 + $0x20] sm:$0xff] %v487_v47  ;;  %617 = vst [vmem:[%s1169_s4 + $0xa0] sm:$0xff] %v551_v48  ;;  %v490_v55 = vadd.f32 %v1164_v24, %v489_v53  ;;  %v554_v56 = vadd.f32 %v1164_v24, %v553_v54 }
 0x145   : > { %604 = vst [vmem:[%s1169_s4 + $0x38] sm:$0xff] %v498_v51  ;;  %620 = vst [vmem:[%s1169_s4 + $0xb8] sm:$0xff] %v562_v52 }
 0x146   : > { %602 = vst [vmem:[%s1169_s4 + $0x28] sm:$0xff] %v490_v55  ;;  %618 = vst [vmem:[%s1169_s4 + $0xa8] sm:$0xff] %v554_v56 }
 0x148   : > { %v820_v57 = vpop.f32.mrb[8].mxu0  ;;  %v836_v58 = vpop.f32.mrb[8].mxu1 }
 0x149   : > { %v511_v59 = vadd.f32 %v820_v57, %v1164_v24  ;;  %v575_v60 = vadd.f32 %v836_v58, %v1164_v24  ;;  %v502_v61 = vpop.f32.mrb[9].mxu0  ;;  %v566_v62 = vpop.f32.mrb[9].mxu1 }
 0x14a   : > { %v503_v63 = vadd.f32 %v1164_v24, %v502_v61  ;;  %v567_v0 = vadd.f32 %v1164_v24, %v566_v62  ;;  %v821_v1 = vpop.f32.mrb[10].mxu0  ;;  %v837_v2 = vpop.f32.mrb[10].mxu1 }
 0x14b   : > { %607 = vst [vmem:[%s1169_s4 + $0x50] sm:$0xff] %v511_v59  ;;  %623 = vst [vmem:[%s1169_s4 + $0xd0] sm:$0xff] %v575_v60  ;;  %v514_v3 = vadd.f32 %v821_v1, %v1164_v24  ;;  %v578_v4 = vadd.f32 %v837_v2, %v1164_v24  ;;  %v505_v5 = vpop.f32.mrb[11].mxu0  ;;  %v569_v6 = vpop.f32.mrb[11].mxu1 }
 0x14c   : > { %605 = vst [vmem:[%s1169_s4 + $0x40] sm:$0xff] %v503_v63  ;;  %621 = vst [vmem:[%s1169_s4 + $0xc0] sm:$0xff] %v567_v0  ;;  %v506_v7 = vadd.f32 %v1164_v24, %v505_v5  ;;  %v570_v8 = vadd.f32 %v1164_v24, %v569_v6 }
 0x14d   : > { %608 = vst [vmem:[%s1169_s4 + $0x58] sm:$0xff] %v514_v3  ;;  %624 = vst [vmem:[%s1169_s4 + $0xd8] sm:$0xff] %v578_v4 }
 0x14e   : > { %606 = vst [vmem:[%s1169_s4 + $0x48] sm:$0xff] %v506_v7  ;;  %622 = vst [vmem:[%s1169_s4 + $0xc8] sm:$0xff] %v570_v8 }
 0x150   : > { %v824_v9 = vpop.f32.mrb[12].mxu0  ;;  %v840_v10 = vpop.f32.mrb[12].mxu1 }
 0x151   : > { %v527_v11 = vadd.f32 %v824_v9, %v1164_v24  ;;  %v591_v12 = vadd.f32 %v840_v10, %v1164_v24  ;;  %v518_v13 = vpop.f32.mrb[13].mxu0  ;;  %v582_v14 = vpop.f32.mrb[13].mxu1 }
 0x152   : > { %v519_v15 = vadd.f32 %v1164_v24, %v518_v13  ;;  %v583_v16 = vadd.f32 %v1164_v24, %v582_v14  ;;  %v825_v17 = vpop.f32.mrb[14].mxu0  ;;  %v841_v18 = vpop.f32.mrb[14].mxu1 }
 0x153   : > { %611 = vst [vmem:[%s1169_s4 + $0x70] sm:$0xff] %v527_v11  ;;  %627 = vst [vmem:[%s1169_s4 + $0xf0] sm:$0xff] %v591_v12  ;;  %v530_v19 = vadd.f32 %v825_v17, %v1164_v24  ;;  %v594_v20 = vadd.f32 %v841_v18, %v1164_v24  ;;  %v521_v21 = vpop.f32.mrb[15].mxu0  ;;  %v585_v22 = vpop.f32.mrb[15].mxu1 }
 0x154   : > { %609 = vst [vmem:[%s1169_s4 + $0x60] sm:$0xff] %v519_v15  ;;  %625 = vst [vmem:[%s1169_s4 + $0xe0] sm:$0xff] %v583_v16  ;;  %v522_v23 = vadd.f32 %v1164_v24, %v521_v21  ;;  %v586_v25 = vadd.f32 %v1164_v24, %v585_v22 }
 0x155   : > { %612 = vst [vmem:[%s1169_s4 + $0x78] sm:$0xff] %v530_v19  ;;  %628 = vst [vmem:[%s1169_s4 + $0xf8] sm:$0xff] %v594_v20 }
 0x156   : > { %610 = vst [vmem:[%s1169_s4 + $0x68] sm:$0xff] %v522_v23  ;;  %626 = vst [vmem:[%s1169_s4 + $0xe8] sm:$0xff] %v586_v25 }
 0x157 PF: > { %s15_s14 = sadd.s32 1, %s1015_s14   ;;  %s1256_s12 = smov %s1011_s13 }
 0x158   : > { %p12_p6 = scmp.ge.s32.totalorder %s15_s14, 4   ;;  %s1257_s13 = smov %s1259_s16 }
 0x15a   :  { %14 = sbr.rel (!%p12_p6) target bundleno = 3 (0x3), region = 73 }
 0x161   :  { %657 = vsyncpa [#allocation3], 1 }
 0x162   :  { %659 = vsyncpa [#allocation3 + $0x1], 1 }
 0x163   :  { %660 = vsyncpa [#allocation5], 1 }

// kernel: forward.12
= control target key start
LH: loop header
LB: loop body
LE: loop exit
PB: predicated region body
PF: predicated region fallthrough
CT: control target
= control target key end

     0   :  { %s970_s12 = smov 0   ;;  %s972_s13 = smov 0   ;;  %s1120_s0 = inlined_call_operand.vmem [shape: bf16[512,128], index: 0, kind: input, shape index: {}]   ;;  %s1121_s1 = inlined_call_operand.vmem [shape: bf16[128,128], index: 1, kind: input, shape index: {}]   ;;  %s1122_s2 = inlined_call_operand.vmem [shape: f32[1,128], index: 2, kind: input, shape index: {}]   ;;  %s1123_s3 = inlined_call_operand.vmem [shape: f32[512,128], index: 3, kind: output, shape index: {}]  }
   0x1   :  { %s974_s14 = smov 0  }
   0x2 LB: > { %s25_s15 = sadd.s32 1, %s944_s13  ;;  %p758_p0 = scmp.ge.s32.totalorder %s948_s14, 1  ;;  %s948_s14 = sphi %s974_s14, %s13_s14   ;;  %s944_s13 = sphi %s972_s13, %s1125_s13   ;;  %s940_s12 = sphi %s970_s12, %s1124_s12  }
   0x3   : > { %p27_p1 = scmp.ge.s32.totalorder %s25_s15, 2  ;;  %p169_p2 = scmp.lt.s32.totalorder %s948_s14, 3 }
   0x5   : > { %s1127_s15 = smov (%p27_p1, %s25_s15), 0  ;;  %p170_p3 = pnand %p758_p0, %p169_p2 }
   0x6   : > { %v902_v0 = vld [vmem:[%s1121_s1] sm:$0xff] (!%p170_p3)   ;;  %s759_s18 = sshll.u32 (!%p170_p3), %s940_s12, 5  ;;  %v903_v1 = vld [vmem:[%s1121_s1 + $0x8] sm:$0xff] (!%p170_p3)   ;;  %v904_v2 = vld [vmem:[%s1121_s1 + $0x10] sm:$0xff] (!%p170_p3)  }
   0x7   : > { %173 = sbr.rel (%p170_p3) target bundleno = 283 (0x11b), region = 32  ;;  %p204_p4 = scmp.lt.s32.totalorder (!%p170_p3), %s759_s18, 63  ;;  %814 = vmatprep.subr.bf16.mxu0 (!%p170_p3), %v902_v0  ;;  %862 = vmatprep.subr.bf16.mxu1 (!%p170_p3), %v902_v0  ;;  %v905_v3 = vld [vmem:[%s1121_s1 + $0x18] sm:$0xff] (!%p170_p3)   ;;  %v906_v6 = vld [vmem:[%s1121_s1 + $0x20] sm:$0xff] (!%p170_p3)   ;;  %v907_v7 = vld [vmem:[%s1121_s1 + $0x28] sm:$0xff] (!%p170_p3)  }
   0x8   : > { %815 = vmatpush3.bf16.msra.mxu0 (!%p170_p3), %v902_v0  ;;  %870 = vmatpush3.bf16.msra.mxu1 (!%p170_p3), %v902_v0  ;;  %v908_v8 = vld [vmem:[%s1121_s1 + $0x30] sm:$0xff] (!%p170_p3)   ;;  %v909_v9 = vld [vmem:[%s1121_s1 + $0x38] sm:$0xff] (!%p170_p3)   ;;  %v1039_v24 = vld [vmem:[%s1122_s2] ss:$0 sm:$0xff] (!%p170_p3) }
   0x9   : > { %816 = vmatprep.subr.bf16.mxu0 (!%p170_p3), %v903_v1  ;;  %863 = vmatprep.subr.bf16.mxu1 (!%p170_p3), %v903_v1 }
   0xc   : > { %817 = vmatpush3.bf16.msra.mxu0 (!%p170_p3), %v903_v1  ;;  %871 = vmatpush3.bf16.msra.mxu1 (!%p170_p3), %v903_v1 }
   0xd   : > { %818 = vmatprep.subr.bf16.mxu0 (!%p170_p3), %v904_v2  ;;  %864 = vmatprep.subr.bf16.mxu1 (!%p170_p3), %v904_v2 }
   0xe   : > { %s1129_s18 = smov (!%p204_p4, %s759_s18), 63 }
   0xf   : > { %s760_s23 = sshll.u32 %s1129_s18, 2  ;;  %s762_s12 = sshll.u32 %s1129_s18, 3 }
  0x10   : > { %s1003_s26 = scalar_lea.vmem %s1120_s0, %s760_s23  ;;  %819 = vmatpush3.bf16.msra.mxu0 %v904_v2  ;;  %872 = vmatpush3.bf16.msra.mxu1 %v904_v2  ;;  %s1047_s19 = scalar_lea.vmem %s1123_s3, %s762_s12 }
  0x11   : > { %v910_v4 = vld [vmem:[%s1003_s26] sm:$0xff]   ;;  %820 = vmatprep.subr.bf16.mxu0 %v905_v3  ;;  %865 = vmatprep.subr.bf16.mxu1 %v905_v3  ;;  %v912_v10 = vld [vmem:[%s1003_s26 + $0x8] sm:$0xff]   ;;  %v914_v12 = vld [vmem:[%s1003_s26 + $0x10] sm:$0xff]  }
  0x12   : > { %v911_v5 = vld [vmem:[%s1003_s26 + $0x40] sm:$0xff]   ;;  %830 = vmatprep.mubr.bf16.mxu0 %v910_v4  ;;  %v913_v11 = vld [vmem:[%s1003_s26 + $0x48] sm:$0xff]   ;;  %v915_v13 = vld [vmem:[%s1003_s26 + $0x50] sm:$0xff]  }
  0x13   : > { %846 = vmatprep.mubr.bf16.mxu1 %v911_v5  ;;  %v916_v14 = vld [vmem:[%s1003_s26 + $0x18] sm:$0xff]   ;;  %v918_v16 = vld [vmem:[%s1003_s26 + $0x20] sm:$0xff]   ;;  %v920_v18 = vld [vmem:[%s1003_s26 + $0x28] sm:$0xff]  }
  0x14   : > { %821 = vmatpush3.bf16.msra.mxu0 %v905_v3  ;;  %873 = vmatpush3.bf16.msra.mxu1 %v905_v3  ;;  %v917_v15 = vld [vmem:[%s1003_s26 + $0x58] sm:$0xff]   ;;  %v919_v17 = vld [vmem:[%s1003_s26 + $0x60] sm:$0xff]   ;;  %v921_v19 = vld [vmem:[%s1003_s26 + $0x68] sm:$0xff]  }
  0x15   : > { %822 = vmatprep.subr.bf16.mxu0 %v906_v6  ;;  %866 = vmatprep.subr.bf16.mxu1 %v906_v6  ;;  %v922_v20 = vld [vmem:[%s1003_s26 + $0x30] sm:$0xff]   ;;  %v924_v22 = vld [vmem:[%s1003_s26 + $0x38] sm:$0xff]  }
  0x16   : > { %v923_v21 = vld [vmem:[%s1003_s26 + $0x70] sm:$0xff]   ;;  %v925_v23 = vld [vmem:[%s1003_s26 + $0x78] sm:$0xff]  }
  0x18   : > { %823 = vmatpush3.bf16.msra.mxu0 %v906_v6  ;;  %874 = vmatpush3.bf16.msra.mxu1 %v906_v6 }
  0x19   : > { %824 = vmatprep.subr.bf16.mxu0 %v907_v7  ;;  %867 = vmatprep.subr.bf16.mxu1 %v907_v7 }
  0x1c   : > { %825 = vmatpush3.bf16.msra.mxu0 %v907_v7  ;;  %875 = vmatpush3.bf16.msra.mxu1 %v907_v7 }
  0x1d   : > { %826 = vmatprep.subr.bf16.mxu0 %v908_v8  ;;  %868 = vmatprep.subr.bf16.mxu1 %v908_v8 }
  0x20   : > { %827 = vmatpush3.bf16.msra.mxu0 %v908_v8  ;;  %876 = vmatpush3.bf16.msra.mxu1 %v908_v8 }
  0x21   : > { %828 = vmatprep.subr.bf16.mxu0 %v909_v9  ;;  %869 = vmatprep.subr.bf16.mxu1 %v909_v9 }
  0x24   : > { %829 = vmatpush3.bf16.msra.mxu0 %v909_v9  ;;  %877 = vmatpush3.bf16.msra.mxu1 %v909_v9 }
  0x27   : > { %831 = vmatmul.mubr.bf16.vlgmr.msra.gmra.mrb[0].mxu0 %v912_v10  ;;  %847 = vmatmul.mubr.bf16.vlgmr.msra.gmra.mrb[0].mxu1 %v913_v11 }
  0x28   : > { %834 = vmatprep.mubr.bf16.mxu0 %v914_v12  ;;  %850 = vmatprep.mubr.bf16.mxu1 %v915_v13 }
  0x2f   : > { %835 = vmatmul.mubr.bf16.gmra.mrb[4].mxu0 %v916_v14  ;;  %851 = vmatmul.mubr.bf16.gmra.mrb[4].mxu1 %v917_v15 }
  0x30   : > { %838 = vmatprep.mubr.bf16.mxu0 %v918_v16  ;;  %854 = vmatprep.mubr.bf16.mxu1 %v919_v17 }
  0x37   : > { %839 = vmatmul.mubr.bf16.gmra.mrb[8].mxu0 %v920_v18  ;;  %855 = vmatmul.mubr.bf16.gmra.mrb[8].mxu1 %v921_v19 }
  0x38   : > { %842 = vmatprep.mubr.bf16.mxu0 %v922_v20  ;;  %858 = vmatprep.mubr.bf16.mxu1 %v923_v21 }
  0x3f   : > { %843 = vmatmul.mubr.bf16.gmra.mrb[12].mxu0 %v924_v22  ;;  %859 = vmatmul.mubr.bf16.gmra.mrb[12].mxu1 %v925_v23 }
  0xfa   : > { %v832_v25 = vpop.f32.mrb[0].mxu0  ;;  %v848_v26 = vpop.f32.mrb[0].mxu1 }
  0xfb   : > { %v468_v27 = vadd.f32 %v832_v25, %v1039_v24  ;;  %v532_v28 = vadd.f32 %v848_v26, %v1039_v24  ;;  %v459_v29 = vpop.f32.mrb[1].mxu0  ;;  %v523_v30 = vpop.f32.mrb[1].mxu1 }
  0xfc   : > { %v460_v31 = vadd.f32 %v1039_v24, %v459_v29  ;;  %v524_v32 = vadd.f32 %v1039_v24, %v523_v30  ;;  %v833_v33 = vpop.f32.mrb[2].mxu0  ;;  %v849_v34 = vpop.f32.mrb[2].mxu1 }
  0xfd   : > { %v588_v35 = vmax.f32 %v468_v27, 0.0  ;;  %v604_v36 = vmax.f32 %v532_v28, 0.0  ;;  %v471_v37 = vadd.f32 %v833_v33, %v1039_v24  ;;  %v535_v38 = vadd.f32 %v849_v34, %v1039_v24  ;;  %v462_v39 = vpop.f32.mrb[3].mxu0  ;;  %v526_v40 = vpop.f32.mrb[3].mxu1 }
  0xfe   : > { %v586_v41 = vmax.f32 %v460_v31, 0.0  ;;  %v602_v42 = vmax.f32 %v524_v32, 0.0  ;;  %v463_v43 = vadd.f32 %v1039_v24, %v462_v39  ;;  %v527_v44 = vadd.f32 %v1039_v24, %v526_v40 }
  0xff   : > { %620 = vst [vmem:[%s1047_s19 + $0x10] sm:$0xff] %v588_v35  ;;  %636 = vst [vmem:[%s1047_s19 + $0x90] sm:$0xff] %v604_v36  ;;  %v589_v45 = vmax.f32 %v471_v37, 0.0  ;;  %v605_v46 = vmax.f32 %v535_v38, 0.0 }
 0x100   : > { %618 = vst [vmem:[%s1047_s19] sm:$0xff] %v586_v41  ;;  %634 = vst [vmem:[%s1047_s19 + $0x80] sm:$0xff] %v602_v42  ;;  %v587_v47 = vmax.f32 %v463_v43, 0.0  ;;  %v603_v48 = vmax.f32 %v527_v44, 0.0 }
 0x101   : > { %621 = vst [vmem:[%s1047_s19 + $0x18] sm:$0xff] %v589_v45  ;;  %637 = vst [vmem:[%s1047_s19 + $0x98] sm:$0xff] %v605_v46 }
 0x102   : > { %619 = vst [vmem:[%s1047_s19 + $0x8] sm:$0xff] %v587_v47  ;;  %635 = vst [vmem:[%s1047_s19 + $0x88] sm:$0xff] %v603_v48  ;;  %v836_v49 = vpop.f32.mrb[4].mxu0  ;;  %v852_v50 = vpop.f32.mrb[4].mxu1 }
 0x103   : > { %v484_v51 = vadd.f32 %v836_v49, %v1039_v24  ;;  %v548_v52 = vadd.f32 %v852_v50, %v1039_v24  ;;  %v475_v53 = vpop.f32.mrb[5].mxu0  ;;  %v539_v54 = vpop.f32.mrb[5].mxu1 }
 0x104   : > { %v476_v55 = vadd.f32 %v1039_v24, %v475_v53  ;;  %v540_v56 = vadd.f32 %v1039_v24, %v539_v54  ;;  %v837_v57 = vpop.f32.mrb[6].mxu0  ;;  %v853_v58 = vpop.f32.mrb[6].mxu1 }
 0x105   : > { %v592_v59 = vmax.f32 %v484_v51, 0.0  ;;  %v608_v60 = vmax.f32 %v548_v52, 0.0  ;;  %v487_v61 = vadd.f32 %v837_v57, %v1039_v24  ;;  %v551_v62 = vadd.f32 %v853_v58, %v1039_v24  ;;  %v478_v63 = vpop.f32.mrb[7].mxu0  ;;  %v542_v0 = vpop.f32.mrb[7].mxu1 }
 0x106   : > { %v590_v1 = vmax.f32 %v476_v55, 0.0  ;;  %v606_v2 = vmax.f32 %v540_v56, 0.0  ;;  %v479_v3 = vadd.f32 %v1039_v24, %v478_v63  ;;  %v543_v4 = vadd.f32 %v1039_v24, %v542_v0 }
 0x107   : > { %624 = vst [vmem:[%s1047_s19 + $0x30] sm:$0xff] %v592_v59  ;;  %640 = vst [vmem:[%s1047_s19 + $0xb0] sm:$0xff] %v608_v60  ;;  %v593_v5 = vmax.f32 %v487_v61, 0.0  ;;  %v609_v6 = vmax.f32 %v551_v62, 0.0 }
 0x108   : > { %622 = vst [vmem:[%s1047_s19 + $0x20] sm:$0xff] %v590_v1  ;;  %638 = vst [vmem:[%s1047_s19 + $0xa0] sm:$0xff] %v606_v2  ;;  %v591_v7 = vmax.f32 %v479_v3, 0.0  ;;  %v607_v8 = vmax.f32 %v543_v4, 0.0 }
 0x109   : > { %625 = vst [vmem:[%s1047_s19 + $0x38] sm:$0xff] %v593_v5  ;;  %641 = vst [vmem:[%s1047_s19 + $0xb8] sm:$0xff] %v609_v6 }
 0x10a   : > { %623 = vst [vmem:[%s1047_s19 + $0x28] sm:$0xff] %v591_v7  ;;  %639 = vst [vmem:[%s1047_s19 + $0xa8] sm:$0xff] %v607_v8  ;;  %v840_v9 = vpop.f32.mrb[8].mxu0  ;;  %v856_v10 = vpop.f32.mrb[8].mxu1 }
 0x10b   : > { %v500_v11 = vadd.f32 %v840_v9, %v1039_v24  ;;  %v564_v12 = vadd.f32 %v856_v10, %v1039_v24  ;;  %v491_v13 = vpop.f32.mrb[9].mxu0  ;;  %v555_v14 = vpop.f32.mrb[9].mxu1 }
 0x10c   : > { %v492_v15 = vadd.f32 %v1039_v24, %v491_v13  ;;  %v556_v16 = vadd.f32 %v1039_v24, %v555_v14  ;;  %v841_v17 = vpop.f32.mrb[10].mxu0  ;;  %v857_v18 = vpop.f32.mrb[10].mxu1 }
 0x10d   : > { %v596_v19 = vmax.f32 %v500_v11, 0.0  ;;  %v612_v20 = vmax.f32 %v564_v12, 0.0  ;;  %v503_v21 = vadd.f32 %v841_v17, %v1039_v24  ;;  %v567_v22 = vadd.f32 %v857_v18, %v1039_v24  ;;  %v494_v23 = vpop.f32.mrb[11].mxu0  ;;  %v558_v25 = vpop.f32.mrb[11].mxu1 }
 0x10e   : > { %v594_v26 = vmax.f32 %v492_v15, 0.0  ;;  %v610_v27 = vmax.f32 %v556_v16, 0.0  ;;  %v495_v28 = vadd.f32 %v1039_v24, %v494_v23  ;;  %v559_v29 = vadd.f32 %v1039_v24, %v558_v25 }
 0x10f   : > { %628 = vst [vmem:[%s1047_s19 + $0x50] sm:$0xff] %v596_v19  ;;  %644 = vst [vmem:[%s1047_s19 + $0xd0] sm:$0xff] %v612_v20  ;;  %v597_v30 = vmax.f32 %v503_v21, 0.0  ;;  %v613_v31 = vmax.f32 %v567_v22, 0.0 }
 0x110   : > { %626 = vst [vmem:[%s1047_s19 + $0x40] sm:$0xff] %v594_v26  ;;  %642 = vst [vmem:[%s1047_s19 + $0xc0] sm:$0xff] %v610_v27  ;;  %v595_v32 = vmax.f32 %v495_v28, 0.0  ;;  %v611_v33 = vmax.f32 %v559_v29, 0.0 }
 0x111   : > { %629 = vst [vmem:[%s1047_s19 + $0x58] sm:$0xff] %v597_v30  ;;  %645 = vst [vmem:[%s1047_s19 + $0xd8] sm:$0xff] %v613_v31 }
 0x112   : > { %627 = vst [vmem:[%s1047_s19 + $0x48] sm:$0xff] %v595_v32  ;;  %643 = vst [vmem:[%s1047_s19 + $0xc8] sm:$0xff] %v611_v33  ;;  %v844_v34 = vpop.f32.mrb[12].mxu0  ;;  %v860_v35 = vpop.f32.mrb[12].mxu1 }
 0x113   : > { %v516_v36 = vadd.f32 %v844_v34, %v1039_v24  ;;  %v580_v37 = vadd.f32 %v860_v35, %v1039_v24  ;;  %v507_v38 = vpop.f32.mrb[13].mxu0  ;;  %v571_v39 = vpop.f32.mrb[13].mxu1 }
 0x114   : > { %v508_v40 = vadd.f32 %v1039_v24, %v507_v38  ;;  %v572_v41 = vadd.f32 %v1039_v24, %v571_v39  ;;  %v845_v42 = vpop.f32.mrb[14].mxu0  ;;  %v861_v43 = vpop.f32.mrb[14].mxu1 }
 0x115   : > { %v600_v44 = vmax.f32 %v516_v36, 0.0  ;;  %v616_v45 = vmax.f32 %v580_v37, 0.0  ;;  %v519_v46 = vadd.f32 %v845_v42, %v1039_v24  ;;  %v583_v47 = vadd.f32 %v861_v43, %v1039_v24  ;;  %v510_v48 = vpop.f32.mrb[15].mxu0  ;;  %v574_v49 = vpop.f32.mrb[15].mxu1 }
 0x116   : > { %v598_v50 = vmax.f32 %v508_v40, 0.0  ;;  %v614_v51 = vmax.f32 %v572_v41, 0.0  ;;  %v511_v52 = vadd.f32 %v1039_v24, %v510_v48  ;;  %v575_v53 = vadd.f32 %v1039_v24, %v574_v49 }
 0x117   : > { %632 = vst [vmem:[%s1047_s19 + $0x70] sm:$0xff] %v600_v44  ;;  %648 = vst [vmem:[%s1047_s19 + $0xf0] sm:$0xff] %v616_v45  ;;  %v601_v54 = vmax.f32 %v519_v46, 0.0  ;;  %v617_v55 = vmax.f32 %v583_v47, 0.0 }
 0x118   : > { %630 = vst [vmem:[%s1047_s19 + $0x60] sm:$0xff] %v598_v50  ;;  %646 = vst [vmem:[%s1047_s19 + $0xe0] sm:$0xff] %v614_v51  ;;  %v599_v56 = vmax.f32 %v511_v52, 0.0  ;;  %v615_v57 = vmax.f32 %v575_v53, 0.0 }
 0x119   : > { %633 = vst [vmem:[%s1047_s19 + $0x78] sm:$0xff] %v601_v54  ;;  %649 = vst [vmem:[%s1047_s19 + $0xf8] sm:$0xff] %v617_v55 }
 0x11a   : > { %631 = vst [vmem:[%s1047_s19 + $0x68] sm:$0xff] %v599_v56  ;;  %647 = vst [vmem:[%s1047_s19 + $0xe8] sm:$0xff] %v615_v57 }
 0x11b PF: > { %s13_s14 = sadd.s32 1, %s948_s14   ;;  %s1124_s12 = smov %s944_s13 }
 0x11c   : > { %p10_p5 = scmp.ge.s32.totalorder %s13_s14, 4   ;;  %s1125_s13 = smov %s1127_s15 }
 0x11e   :  { %12 = sbr.rel (!%p10_p5) target bundleno = 2 (0x2), region = 68 }

// kernel: forward.13
= control target key start
LH: loop header
LB: loop body
LE: loop exit
PB: predicated region body
PF: predicated region fallthrough
CT: control target
= control target key end

     0   :  { %s499_s1 = inlined_call_operand.vmem [shape: bf16[128,128], index: 1, kind: input, shape index: {}]   ;;  %s500_s0 = inlined_call_operand.vmem [shape: bf16[128,128], index: 0, kind: input, shape index: {}]   ;;  %s501_s2 = inlined_call_operand.vmem [shape: f32[1,128], index: 2, kind: input, shape index: {}]   ;;  %s502_s3 = inlined_call_operand.vmem [shape: f32[128,128], index: 3, kind: output, shape index: {}]  }
   0x1   :  { %v364_v0 = vld [vmem:[%s499_s1] sm:$0xff]   ;;  %v365_v1 = vld [vmem:[%s499_s1 + $0x8] sm:$0xff]   ;;  %v366_v2 = vld [vmem:[%s499_s1 + $0x10] sm:$0xff]  }
   0x2   :  { %316 = vmatprep.subr.bf16.mxu0 %v364_v0  ;;  %348 = vmatprep.subr.bf16.mxu1 %v364_v0  ;;  %v367_v3 = vld [vmem:[%s499_s1 + $0x18] sm:$0xff]   ;;  %v372_v4 = vld [vmem:[%s500_s0] sm:$0xff]   ;;  %v369_v7 = vld [vmem:[%s499_s1 + $0x28] sm:$0xff]  }
   0x3   :  { %317 = vmatpush3.bf16.msra.mxu0 %v364_v0  ;;  %356 = vmatpush3.bf16.msra.mxu1 %v364_v0  ;;  %v373_v5 = vld [vmem:[%s500_s0 + $0x20] sm:$0xff]   ;;  %v370_v8 = vld [vmem:[%s499_s1 + $0x30] sm:$0xff]   ;;  %v371_v9 = vld [vmem:[%s499_s1 + $0x38] sm:$0xff]  }
   0x4   :  { %318 = vmatprep.subr.bf16.mxu0 %v365_v1  ;;  %349 = vmatprep.subr.bf16.mxu1 %v365_v1  ;;  %v368_v6 = vld [vmem:[%s499_s1 + $0x20] sm:$0xff]   ;;  %v374_v10 = vld [vmem:[%s500_s0 + $0x8] sm:$0xff]   ;;  %v376_v12 = vld [vmem:[%s500_s0 + $0x10] sm:$0xff]  }
   0x5   :  { %332 = vmatprep.mubr.bf16.mxu0 %v372_v4  ;;  %340 = vmatprep.mubr.bf16.mxu1 %v373_v5  ;;  %v375_v11 = vld [vmem:[%s500_s0 + $0x28] sm:$0xff]   ;;  %v377_v13 = vld [vmem:[%s500_s0 + $0x30] sm:$0xff]   ;;  %v378_v14 = vld [vmem:[%s500_s0 + $0x18] sm:$0xff]  }
   0x6   :  { %v379_v15 = vld [vmem:[%s500_s0 + $0x38] sm:$0xff]   ;;  %v283_v16 = vld [vmem:[%s501_s2] ss:$0 sm:$0xff] }
   0x7   :  { %319 = vmatpush3.bf16.msra.mxu0 %v365_v1  ;;  %357 = vmatpush3.bf16.msra.mxu1 %v365_v1 }
   0x8   :  { %320 = vmatprep.subr.bf16.mxu0 %v366_v2  ;;  %350 = vmatprep.subr.bf16.mxu1 %v366_v2 }
   0xb   :  { %321 = vmatpush3.bf16.msra.mxu0 %v366_v2  ;;  %358 = vmatpush3.bf16.msra.mxu1 %v366_v2 }
   0xc   :  { %322 = vmatprep.subr.bf16.mxu0 %v367_v3  ;;  %351 = vmatprep.subr.bf16.mxu1 %v367_v3 }
   0xf   :  { %323 = vmatpush3.bf16.msra.mxu0 %v367_v3  ;;  %359 = vmatpush3.bf16.msra.mxu1 %v367_v3 }
  0x10   :  { %324 = vmatprep.subr.bf16.mxu0 %v368_v6  ;;  %352 = vmatprep.subr.bf16.mxu1 %v368_v6 }
  0x13   :  { %325 = vmatpush3.bf16.msra.mxu0 %v368_v6  ;;  %360 = vmatpush3.bf16.msra.mxu1 %v368_v6 }
  0x14   :  { %326 = vmatprep.subr.bf16.mxu0 %v369_v7  ;;  %353 = vmatprep.subr.bf16.mxu1 %v369_v7 }
  0x17   :  { %327 = vmatpush3.bf16.msra.mxu0 %v369_v7  ;;  %361 = vmatpush3.bf16.msra.mxu1 %v369_v7 }
  0x18   :  { %328 = vmatprep.subr.bf16.mxu0 %v370_v8  ;;  %354 = vmatprep.subr.bf16.mxu1 %v370_v8 }
  0x1b   :  { %329 = vmatpush3.bf16.msra.mxu0 %v370_v8  ;;  %362 = vmatpush3.bf16.msra.mxu1 %v370_v8 }
  0x1c   :  { %330 = vmatprep.subr.bf16.mxu0 %v371_v9  ;;  %355 = vmatprep.subr.bf16.mxu1 %v371_v9 }
  0x1f   :  { %331 = vmatpush3.bf16.msra.mxu0 %v371_v9  ;;  %363 = vmatpush3.bf16.msra.mxu1 %v371_v9 }
  0x22   :  { %333 = vmatmul.mubr.bf16.vlgmr.msra.gmra.mrb[0].mxu0 %v374_v10  ;;  %341 = vmatmul.mubr.bf16.vlgmr.msra.gmra.mrb[0].mxu1 %v375_v11 }
  0x23   :  { %336 = vmatprep.mubr.bf16.mxu0 %v376_v12  ;;  %344 = vmatprep.mubr.bf16.mxu1 %v377_v13 }
  0x2a   :  { %337 = vmatmul.mubr.bf16.gmra.mrb[4].mxu0 %v378_v14  ;;  %345 = vmatmul.mubr.bf16.gmra.mrb[4].mxu1 %v379_v15 }
  0xf5   :  { %v334_v17 = vpop.f32.mrb[0].mxu0  ;;  %v342_v18 = vpop.f32.mrb[0].mxu1 }
  0xf6   :  { %v193_v19 = vadd.f32 %v334_v17, %v283_v16  ;;  %v225_v20 = vadd.f32 %v342_v18, %v283_v16  ;;  %v184_v21 = vpop.f32.mrb[1].mxu0  ;;  %v216_v22 = vpop.f32.mrb[1].mxu1 }
  0xf7   :  { %v185_v23 = vadd.f32 %v283_v16, %v184_v21  ;;  %v217_v24 = vadd.f32 %v283_v16, %v216_v22  ;;  %v335_v25 = vpop.f32.mrb[2].mxu0  ;;  %v343_v26 = vpop.f32.mrb[2].mxu1 }
  0xf8   :  { %v249_v27 = vmax.f32 %v193_v19, 0.0  ;;  %v257_v28 = vmax.f32 %v225_v20, 0.0  ;;  %v196_v29 = vadd.f32 %v335_v25, %v283_v16  ;;  %v228_v30 = vadd.f32 %v343_v26, %v283_v16  ;;  %v187_v31 = vpop.f32.mrb[3].mxu0  ;;  %v219_v32 = vpop.f32.mrb[3].mxu1 }
  0xf9   :  { %v247_v33 = vmax.f32 %v185_v23, 0.0  ;;  %v255_v34 = vmax.f32 %v217_v24, 0.0  ;;  %v188_v35 = vadd.f32 %v283_v16, %v187_v31  ;;  %v220_v36 = vadd.f32 %v283_v16, %v219_v32 }
  0xfa   :  { %265 = vst [vmem:[%s502_s3 + $0x10] sm:$0xff] %v249_v27  ;;  %273 = vst [vmem:[%s502_s3 + $0x50] sm:$0xff] %v257_v28  ;;  %v250_v37 = vmax.f32 %v196_v29, 0.0  ;;  %v258_v38 = vmax.f32 %v228_v30, 0.0 }
  0xfb   :  { %263 = vst [vmem:[%s502_s3] sm:$0xff] %v247_v33  ;;  %271 = vst [vmem:[%s502_s3 + $0x40] sm:$0xff] %v255_v34  ;;  %v248_v39 = vmax.f32 %v188_v35, 0.0  ;;  %v256_v40 = vmax.f32 %v220_v36, 0.0 }
  0xfc   :  { %266 = vst [vmem:[%s502_s3 + $0x18] sm:$0xff] %v250_v37  ;;  %274 = vst [vmem:[%s502_s3 + $0x58] sm:$0xff] %v258_v38 }
  0xfd   :  { %264 = vst [vmem:[%s502_s3 + $0x8] sm:$0xff] %v248_v39  ;;  %272 = vst [vmem:[%s502_s3 + $0x48] sm:$0xff] %v256_v40  ;;  %v338_v41 = vpop.f32.mrb[4].mxu0  ;;  %v346_v42 = vpop.f32.mrb[4].mxu1 }
  0xfe   :  { %v209_v43 = vadd.f32 %v338_v41, %v283_v16  ;;  %v241_v44 = vadd.f32 %v346_v42, %v283_v16  ;;  %v200_v45 = vpop.f32.mrb[5].mxu0  ;;  %v232_v46 = vpop.f32.mrb[5].mxu1 }
  0xff   :  { %v201_v47 = vadd.f32 %v283_v16, %v200_v45  ;;  %v233_v48 = vadd.f32 %v283_v16, %v232_v46  ;;  %v339_v49 = vpop.f32.mrb[6].mxu0  ;;  %v347_v50 = vpop.f32.mrb[6].mxu1 }
 0x100   :  { %v253_v51 = vmax.f32 %v209_v43, 0.0  ;;  %v261_v52 = vmax.f32 %v241_v44, 0.0  ;;  %v212_v53 = vadd.f32 %v339_v49, %v283_v16  ;;  %v244_v54 = vadd.f32 %v347_v50, %v283_v16  ;;  %v203_v55 = vpop.f32.mrb[7].mxu0  ;;  %v235_v56 = vpop.f32.mrb[7].mxu1 }
 0x101   :  { %v251_v57 = vmax.f32 %v201_v47, 0.0  ;;  %v259_v58 = vmax.f32 %v233_v48, 0.0  ;;  %v204_v59 = vadd.f32 %v283_v16, %v203_v55  ;;  %v236_v60 = vadd.f32 %v283_v16, %v235_v56 }
 0x102   :  { %269 = vst [vmem:[%s502_s3 + $0x30] sm:$0xff] %v253_v51  ;;  %277 = vst [vmem:[%s502_s3 + $0x70] sm:$0xff] %v261_v52  ;;  %v254_v61 = vmax.f32 %v212_v53, 0.0  ;;  %v262_v62 = vmax.f32 %v244_v54, 0.0 }
 0x103   :  { %267 = vst [vmem:[%s502_s3 + $0x20] sm:$0xff] %v251_v57  ;;  %275 = vst [vmem:[%s502_s3 + $0x60] sm:$0xff] %v259_v58  ;;  %v252_v63 = vmax.f32 %v204_v59, 0.0  ;;  %v260_v0 = vmax.f32 %v236_v60, 0.0 }
 0x104   :  { %270 = vst [vmem:[%s502_s3 + $0x38] sm:$0xff] %v254_v61  ;;  %278 = vst [vmem:[%s502_s3 + $0x78] sm:$0xff] %v262_v62 }
 0x105   :  { %268 = vst [vmem:[%s502_s3 + $0x28] sm:$0xff] %v252_v63  ;;  %276 = vst [vmem:[%s502_s3 + $0x68] sm:$0xff] %v260_v0 }

// kernel: forward.14
= control target key start
LH: loop header
LB: loop body
LE: loop exit
PB: predicated region body
PF: predicated region fallthrough
CT: control target
= control target key end

     0   :  { %s417_s1 = inlined_call_operand.vmem [shape: bf16[256,128], index: 1, kind: input, shape index: {}]   ;;  %s418_s0 = inlined_call_operand.vmem [shape: bf16[32,256], index: 0, kind: input, shape index: {}]   ;;  %s419_s2 = inlined_call_operand.vmem [shape: f32[1,128], index: 2, kind: input, shape index: {}]   ;;  %s420_s3 = inlined_call_operand.vmem [shape: f32[32,128], index: 3, kind: output, shape index: {}]  }
   0x1   :  { %v300_v0 = vld [vmem:[%s417_s1 + $0x40] sm:$0xff]   ;;  %v302_v2 = vld [vmem:[%s417_s1 + $0x48] sm:$0xff]   ;;  %v304_v4 = vld [vmem:[%s417_s1 + $0x50] sm:$0xff]  }
   0x2   :  { %v301_v1 = vld [vmem:[%s417_s1] sm:$0xff]   ;;  %256 = vmatprep.subr.bf16.mxu0 %v300_v0  ;;  %284 = vmatprep.subr.bf16.mxu1 %v300_v0  ;;  %v303_v3 = vld [vmem:[%s417_s1 + $0x8] sm:$0xff]   ;;  %v305_v5 = vld [vmem:[%s417_s1 + $0x10] sm:$0xff]  }
   0x3   :  { %257 = vmatpush3.bf16.msra.mxu0 %v301_v1  ;;  %292 = vmatpush3.bf16.msra.mxu1 %v301_v1  ;;  %v306_v6 = vld [vmem:[%s417_s1 + $0x58] sm:$0xff]   ;;  %v308_v8 = vld [vmem:[%s417_s1 + $0x60] sm:$0xff]   ;;  %v310_v10 = vld [vmem:[%s417_s1 + $0x68] sm:$0xff]  }
   0x4   :  { %258 = vmatprep.subr.bf16.mxu0 %v302_v2  ;;  %285 = vmatprep.subr.bf16.mxu1 %v302_v2  ;;  %v307_v7 = vld [vmem:[%s417_s1 + $0x18] sm:$0xff]   ;;  %v309_v9 = vld [vmem:[%s417_s1 + $0x20] sm:$0xff]   ;;  %v311_v13 = vld [vmem:[%s417_s1 + $0x28] sm:$0xff]  }
   0x5   :  { %v318_v11 = vld [vmem:[%s418_s0 + $0x4] ss:$8 sps:$4 sm:$0xff]   ;;  %v321_v12 = vld [vmem:[%s418_s0 + $0x14] ss:$8 sps:$4 sm:$0xff]   ;;  %v316_v18 = vld [vmem:[%s418_s0] ss:$8 sps:$4 sm:$0xff]  }
   0x6   :  { %v312_v14 = vld [vmem:[%s417_s1 + $0x70] sm:$0xff]   ;;  %206 = vmatprep.mubr.bf16.mxu0 %v318_v11  ;;  %214 = vmatprep.mubr.bf16.mxu1 %v321_v12  ;;  %v314_v16 = vld [vmem:[%s417_s1 + $0x78] sm:$0xff]   ;;  %v235_v22 = vld [vmem:[%s419_s2] ss:$0 sm:$0xff] }
   0x7   :  { %259 = vmatpush3.bf16.msra.mxu0 %v303_v3  ;;  %293 = vmatpush3.bf16.msra.mxu1 %v303_v3  ;;  %v313_v15 = vld [vmem:[%s417_s1 + $0x30] sm:$0xff]   ;;  %v315_v17 = vld [vmem:[%s417_s1 + $0x38] sm:$0xff]  }
   0x8   :  { %260 = vmatprep.subr.bf16.mxu0 %v304_v4  ;;  %286 = vmatprep.subr.bf16.mxu1 %v304_v4  ;;  %v319_v19 = vld [vmem:[%s418_s0 + $0x10] ss:$8 sps:$4 sm:$0xff]  }
   0xb   :  { %261 = vmatpush3.bf16.msra.mxu0 %v305_v5  ;;  %294 = vmatpush3.bf16.msra.mxu1 %v305_v5 }
   0xc   :  { %262 = vmatprep.subr.bf16.mxu0 %v306_v6  ;;  %287 = vmatprep.subr.bf16.mxu1 %v306_v6 }
   0xf   :  { %263 = vmatpush3.bf16.msra.mxu0 %v307_v7  ;;  %295 = vmatpush3.bf16.msra.mxu1 %v307_v7 }
  0x10   :  { %264 = vmatprep.subr.bf16.mxu0 %v308_v8  ;;  %288 = vmatprep.subr.bf16.mxu1 %v308_v8 }
  0x13   :  { %265 = vmatpush3.bf16.msra.mxu0 %v309_v9  ;;  %296 = vmatpush3.bf16.msra.mxu1 %v309_v9 }
  0x14   :  { %266 = vmatprep.subr.bf16.mxu0 %v310_v10  ;;  %289 = vmatprep.subr.bf16.mxu1 %v310_v10 }
  0x17   :  { %267 = vmatpush3.bf16.msra.mxu0 %v311_v13  ;;  %297 = vmatpush3.bf16.msra.mxu1 %v311_v13 }
  0x18   :  { %268 = vmatprep.subr.bf16.mxu0 %v312_v14  ;;  %290 = vmatprep.subr.bf16.mxu1 %v312_v14 }
  0x1b   :  { %269 = vmatpush3.bf16.msra.mxu0 %v313_v15  ;;  %298 = vmatpush3.bf16.msra.mxu1 %v313_v15 }
  0x1c   :  { %270 = vmatprep.subr.bf16.mxu0 %v314_v16  ;;  %291 = vmatprep.subr.bf16.mxu1 %v314_v16 }
  0x1f   :  { %271 = vmatpush3.bf16.msra.mxu0 %v315_v17  ;;  %299 = vmatpush3.bf16.msra.mxu1 %v315_v17 }
  0x22   :  { %207 = vmatmul.mubr.bf16.vlgmr.msra.gmra.mrb[0].mxu0 %v316_v18  ;;  %215 = vmatmul.mubr.bf16.vlgmr.msra.gmra.mrb[0].mxu1 %v319_v19 }
  0xf5   :  { %v272_v20 = vpop.f32.mrb[0].mxu0  ;;  %v278_v21 = vpop.f32.mrb[0].mxu1 }
  0xf6   :  { %v273_v23 = vpop.f32.mrb[1].mxu0  ;;  %v279_v24 = vpop.f32.mrb[1].mxu1 }
  0xf7   :  { %v274_v25 = vadd.f32 %v273_v23, %v272_v20  ;;  %v280_v26 = vadd.f32 %v279_v24, %v278_v21  ;;  %v275_v27 = vpop.f32.mrb[2].mxu0  ;;  %v281_v28 = vpop.f32.mrb[2].mxu1 }
  0xf8   :  { %v276_v29 = vpop.f32.mrb[3].mxu0  ;;  %v282_v30 = vpop.f32.mrb[3].mxu1 }
  0xf9   :  { %v209_v31 = vadd.f32 %v274_v25, %v235_v22  ;;  %v217_v32 = vadd.f32 %v280_v26, %v235_v22  ;;  %v277_v33 = vadd.f32 %v276_v29, %v275_v27  ;;  %v283_v34 = vadd.f32 %v282_v30, %v281_v28 }
  0xfb   :  { %v223_v35 = vmax.f32 %v209_v31, 0.0  ;;  %v225_v36 = vmax.f32 %v217_v32, 0.0  ;;  %v212_v37 = vadd.f32 %v277_v33, %v235_v22  ;;  %v220_v38 = vadd.f32 %v283_v34, %v235_v22 }
  0xfd   :  { %227 = vst [vmem:[%s420_s3] sm:$0xff] %v223_v35  ;;  %229 = vst [vmem:[%s420_s3 + $0x10] sm:$0xff] %v225_v36  ;;  %v224_v39 = vmax.f32 %v212_v37, 0.0  ;;  %v226_v40 = vmax.f32 %v220_v38, 0.0 }
  0xff   :  { %228 = vst [vmem:[%s420_s3 + $0x8] sm:$0xff] %v224_v39  ;;  %230 = vst [vmem:[%s420_s3 + $0x18] sm:$0xff] %v226_v40 }

// kernel: forward.15
= control target key start
LH: loop header
LB: loop body
LE: loop exit
PB: predicated region body
PF: predicated region fallthrough
CT: control target
= control target key end

     0   :  { %s610_s1 = inlined_call_operand.vmem [shape: bf16[384,128], index: 1, kind: input, shape index: {}]   ;;  %s611_s0 = inlined_call_operand.vmem [shape: bf16[32,384], index: 0, kind: input, shape index: {}]   ;;  %s612_s2 = inlined_call_operand.vmem [shape: f32[1,128], index: 2, kind: input, shape index: {}]   ;;  %s613_s3 = inlined_call_operand.vmem [shape: f32[32,128], index: 3, kind: output, shape index: {}]  }
   0x1   :  { %v453_v0 = vld [vmem:[%s610_s1 + $0x40] sm:$0xff]   ;;  %v455_v2 = vld [vmem:[%s610_s1 + $0x48] sm:$0xff]   ;;  %v458_v5 = vld [vmem:[%s610_s1 + $0x50] sm:$0xff]  }
   0x2   :  { %v454_v1 = vld [vmem:[%s610_s1] sm:$0xff]   ;;  %395 = vmatprep.subr.bf16.mxu0 %v453_v0  ;;  %v457_v4 = vld [vmem:[%s610_s1 + $0x8] sm:$0xff]   ;;  %v460_v7 = vld [vmem:[%s610_s1 + $0x10] sm:$0xff]  }
   0x3   :  { %396 = vmatpush3.bf16.msra.mxu0 %v454_v1  ;;  %v456_v3 = vld [vmem:[%s610_s1 + $0x80] sm:$0xff]   ;;  %v459_v6 = vld [vmem:[%s610_s1 + $0x88] sm:$0xff]   ;;  %v461_v8 = vld [vmem:[%s610_s1 + $0x58] sm:$0xff]  }
   0x4   :  { %397 = vmatprep.subr.bf16.mxu0 %v455_v2  ;;  %433 = vmatprep.subr.bf16.mxu1 %v456_v3  ;;  %v462_v9 = vld [vmem:[%s610_s1 + $0x90] sm:$0xff]   ;;  %v463_v10 = vld [vmem:[%s610_s1 + $0x18] sm:$0xff]   ;;  %v464_v11 = vld [vmem:[%s610_s1 + $0x60] sm:$0xff]  }
   0x5   :  { %434 = vmatpush3.bf16.msra.mxu1 %v456_v3  ;;  %v465_v12 = vld [vmem:[%s610_s1 + $0x98] sm:$0xff]   ;;  %v466_v13 = vld [vmem:[%s610_s1 + $0x20] sm:$0xff]   ;;  %v467_v15 = vld [vmem:[%s610_s1 + $0x68] sm:$0xff]  }
   0x6   :  { %435 = vmatprep.subr.bf16.mxu1 %v459_v6  ;;  %v468_v14 = vld [vmem:[%s610_s1 + $0xa0] sm:$0xff]   ;;  %v469_v16 = vld [vmem:[%s610_s1 + $0x28] sm:$0xff]   ;;  %v470_v18 = vld [vmem:[%s610_s1 + $0x70] sm:$0xff]  }
   0x7   :  { %398 = vmatpush3.bf16.msra.mxu0 %v457_v4  ;;  %v471_v17 = vld [vmem:[%s610_s1 + $0xa8] sm:$0xff]   ;;  %v472_v19 = vld [vmem:[%s610_s1 + $0x30] sm:$0xff]   ;;  %v473_v20 = vld [vmem:[%s610_s1 + $0x78] sm:$0xff]  }
   0x8   :  { %399 = vmatprep.subr.bf16.mxu0 %v458_v5  ;;  %v474_v21 = vld [vmem:[%s610_s1 + $0xb0] sm:$0xff]   ;;  %v475_v23 = vld [vmem:[%s610_s1 + $0x38] sm:$0xff]   ;;  %v476_v26 = vld [vmem:[%s611_s0] ss:$12 sps:$4 sm:$0xff]  }
   0x9   :  { %436 = vmatpush3.bf16.msra.mxu1 %v459_v6  ;;  %v478_v22 = vld [vmem:[%s611_s0 + $0x4] ss:$12 sps:$4 sm:$0xff]   ;;  %v480_v24 = vld [vmem:[%s611_s0 + $0x8] ss:$12 sps:$4 sm:$0xff]   ;;  %v479_v25 = vld [vmem:[%s610_s1 + $0xb8] sm:$0xff]  }
   0xa   :  { %437 = vmatprep.subr.bf16.mxu1 %v462_v9  ;;  %286 = vmatprep.mubr.bf16.mxu0 %v478_v22  ;;  %v482_v27 = vld [vmem:[%s611_s0 + $0x1c] ss:$12 sps:$4 sm:$0xff]   ;;  %v481_v28 = vld [vmem:[%s611_s0 + $0x20] ss:$12 sps:$4 sm:$0xff]   ;;  %v484_v29 = vld [vmem:[%s611_s0 + $0x18] ss:$12 sps:$4 sm:$0xff]  }
   0xb   :  { %400 = vmatpush3.bf16.msra.mxu0 %v460_v7  ;;  %449 = vmatprep.mubr.bf16.mxu1 %v480_v24  ;;  %v364_v32 = vld [vmem:[%s612_s2] ss:$0 sm:$0xff] }
   0xc   :  { %401 = vmatprep.subr.bf16.mxu0 %v461_v8 }
   0xd   :  { %438 = vmatpush3.bf16.msra.mxu1 %v462_v9 }
   0xe   :  { %439 = vmatprep.subr.bf16.mxu1 %v465_v12 }
   0xf   :  { %402 = vmatpush3.bf16.msra.mxu0 %v463_v10 }
  0x10   :  { %403 = vmatprep.subr.bf16.mxu0 %v464_v11 }
  0x11   :  { %440 = vmatpush3.bf16.msra.mxu1 %v465_v12 }
  0x12   :  { %441 = vmatprep.subr.bf16.mxu1 %v468_v14 }
  0x13   :  { %404 = vmatpush3.bf16.msra.mxu0 %v466_v13 }
  0x14   :  { %405 = vmatprep.subr.bf16.mxu0 %v467_v15 }
  0x15   :  { %442 = vmatpush3.bf16.msra.mxu1 %v468_v14 }
  0x16   :  { %443 = vmatprep.subr.bf16.mxu1 %v471_v17 }
  0x17   :  { %406 = vmatpush3.bf16.msra.mxu0 %v469_v16 }
  0x18   :  { %407 = vmatprep.subr.bf16.mxu0 %v470_v18 }
  0x19   :  { %444 = vmatpush3.bf16.msra.mxu1 %v471_v17 }
  0x1a   :  { %445 = vmatprep.subr.bf16.mxu1 %v474_v21 }
  0x1b   :  { %408 = vmatpush3.bf16.msra.mxu0 %v472_v19 }
  0x1c   :  { %409 = vmatprep.subr.bf16.mxu0 %v473_v20 }
  0x1d   :  { %446 = vmatpush3.bf16.msra.mxu1 %v474_v21 }
  0x1e   :  { %447 = vmatprep.subr.bf16.mxu1 %v479_v25 }
  0x1f   :  { %410 = vmatpush3.bf16.msra.mxu0 %v475_v23 }
  0x21   :  { %448 = vmatpush3.bf16.msra.mxu1 %v479_v25 }
  0x22   :  { %287 = vmatmul.mubr.bf16.vlgmr.msra.gmra.mrb[0].mxu0 %v476_v26 }
  0x23   :  { %294 = vmatprep.mubr.bf16.mxu0 %v482_v27 }
  0x24   :  { %450 = vmatmul.mubr.bf16.vlgmr.msra.gmra.mrb[0].mxu1 %v481_v28 }
  0x2a   :  { %295 = vmatmul.mubr.bf16.gmra.mrb[4].mxu0 %v484_v29 }
  0xf5   :  { %v411_v30 = vpop.f32.mrb[0].mxu0 }
  0xf6   :  { %v412_v31 = vpop.f32.mrb[1].mxu0 }
  0xf7   :  { %v413_v33 = vadd.f32 %v412_v31, %v411_v30  ;;  %v414_v34 = vpop.f32.mrb[2].mxu0  ;;  %v451_v36 = vpop.f32.mrb[0].mxu1 }
  0xf8   :  { %v415_v35 = vpop.f32.mrb[3].mxu0  ;;  %v337_v39 = vpop.f32.mrb[1].mxu1 }
  0xf9   :  { %v416_v37 = vadd.f32 %v415_v35, %v414_v34  ;;  %v289_v38 = vadd.f32 %v413_v33, %v364_v32  ;;  %v452_v40 = vpop.f32.mrb[2].mxu1 }
  0xfa   :  { %v340_v43 = vpop.f32.mrb[3].mxu1 }
  0xfb   :  { %v338_v41 = vadd.f32 %v337_v39, %v289_v38  ;;  %v292_v42 = vadd.f32 %v416_v37, %v364_v32 }
  0xfd   :  { %v352_v44 = vmax.f32 %v338_v41, 0.0  ;;  %v341_v45 = vadd.f32 %v340_v43, %v292_v42  ;;  %v417_v46 = vpop.f32.mrb[4].mxu0 }
  0xfe   :  { %v418_v47 = vpop.f32.mrb[5].mxu0 }
  0xff   :  { %356 = vst [vmem:[%s613_s3] sm:$0xff] %v352_v44  ;;  %v353_v48 = vmax.f32 %v341_v45, 0.0  ;;  %v419_v49 = vadd.f32 %v418_v47, %v417_v46  ;;  %v420_v50 = vpop.f32.mrb[6].mxu0 }
 0x100   :  { %v421_v51 = vpop.f32.mrb[7].mxu0 }
 0x101   :  { %357 = vst [vmem:[%s613_s3 + $0x8] sm:$0xff] %v353_v48  ;;  %v297_v52 = vadd.f32 %v419_v49, %v364_v32  ;;  %v422_v53 = vadd.f32 %v421_v51, %v420_v50 }
 0x103   :  { %v346_v54 = vadd.f32 %v451_v36, %v297_v52  ;;  %v300_v55 = vadd.f32 %v422_v53, %v364_v32 }
 0x105   :  { %v354_v56 = vmax.f32 %v346_v54, 0.0  ;;  %v349_v57 = vadd.f32 %v452_v40, %v300_v55 }
 0x107   :  { %358 = vst [vmem:[%s613_s3 + $0x10] sm:$0xff] %v354_v56  ;;  %v355_v58 = vmax.f32 %v349_v57, 0.0 }
 0x109   :  { %359 = vst [vmem:[%s613_s3 + $0x18] sm:$0xff] %v355_v58 }

// kernel: forward.16
= control target key start
LH: loop header
LB: loop body
LE: loop exit
PB: predicated region body
PF: predicated region fallthrough
CT: control target
= control target key end

     0   :  { %s634_s1 = inlined_call_operand.vmem [shape: bf16[384,128], index: 1, kind: input, shape index: {}]   ;;  %s635_s0 = inlined_call_operand.vmem [shape: bf16[32,384], index: 0, kind: input, shape index: {}]   ;;  %s636_s2 = inlined_call_operand.vmem [shape: f32[1,128], index: 2, kind: input, shape index: {}]   ;;  %s637_s3 = inlined_call_operand.vmem [shape: f32[32,128], index: 3, kind: input, shape index: {}]   ;;  %s638_s4 = inlined_call_operand.vmem [shape: f32[32,128], index: 4, kind: output, shape index: {}]  }
   0x1   :  { %v460_v0 = vld [vmem:[%s634_s1 + $0x40] sm:$0xff]   ;;  %v462_v2 = vld [vmem:[%s634_s1 + $0x48] sm:$0xff]   ;;  %v465_v5 = vld [vmem:[%s634_s1 + $0x50] sm:$0xff]  }
   0x2   :  { %v461_v1 = vld [vmem:[%s634_s1] sm:$0xff]   ;;  %402 = vmatprep.subr.bf16.mxu0 %v460_v0  ;;  %v464_v4 = vld [vmem:[%s634_s1 + $0x8] sm:$0xff]   ;;  %v467_v7 = vld [vmem:[%s634_s1 + $0x10] sm:$0xff]  }
   0x3   :  { %403 = vmatpush3.bf16.msra.mxu0 %v461_v1  ;;  %v463_v3 = vld [vmem:[%s634_s1 + $0x80] sm:$0xff]   ;;  %v466_v6 = vld [vmem:[%s634_s1 + $0x88] sm:$0xff]   ;;  %v468_v8 = vld [vmem:[%s634_s1 + $0x58] sm:$0xff]  }
   0x4   :  { %404 = vmatprep.subr.bf16.mxu0 %v462_v2  ;;  %440 = vmatprep.subr.bf16.mxu1 %v463_v3  ;;  %v469_v9 = vld [vmem:[%s634_s1 + $0x90] sm:$0xff]   ;;  %v470_v10 = vld [vmem:[%s634_s1 + $0x18] sm:$0xff]   ;;  %v471_v11 = vld [vmem:[%s634_s1 + $0x60] sm:$0xff]  }
   0x5   :  { %441 = vmatpush3.bf16.msra.mxu1 %v463_v3  ;;  %v472_v12 = vld [vmem:[%s634_s1 + $0x98] sm:$0xff]   ;;  %v473_v13 = vld [vmem:[%s634_s1 + $0x20] sm:$0xff]   ;;  %v474_v15 = vld [vmem:[%s634_s1 + $0x68] sm:$0xff]  }
   0x6   :  { %442 = vmatprep.subr.bf16.mxu1 %v466_v6  ;;  %v475_v14 = vld [vmem:[%s634_s1 + $0xa0] sm:$0xff]   ;;  %v476_v16 = vld [vmem:[%s634_s1 + $0x28] sm:$0xff]   ;;  %v477_v18 = vld [vmem:[%s634_s1 + $0x70] sm:$0xff]  }
   0x7   :  { %405 = vmatpush3.bf16.msra.mxu0 %v464_v4  ;;  %v478_v17 = vld [vmem:[%s634_s1 + $0xa8] sm:$0xff]   ;;  %v479_v19 = vld [vmem:[%s634_s1 + $0x30] sm:$0xff]   ;;  %v480_v20 = vld [vmem:[%s634_s1 + $0x78] sm:$0xff]  }
   0x8   :  { %406 = vmatprep.subr.bf16.mxu0 %v465_v5  ;;  %v481_v21 = vld [vmem:[%s634_s1 + $0xb0] sm:$0xff]   ;;  %v482_v23 = vld [vmem:[%s634_s1 + $0x38] sm:$0xff]   ;;  %v483_v26 = vld [vmem:[%s635_s0] ss:$12 sps:$4 sm:$0xff]  }
   0x9   :  { %443 = vmatpush3.bf16.msra.mxu1 %v466_v6  ;;  %v485_v22 = vld [vmem:[%s635_s0 + $0x4] ss:$12 sps:$4 sm:$0xff]   ;;  %v487_v24 = vld [vmem:[%s635_s0 + $0x8] ss:$12 sps:$4 sm:$0xff]   ;;  %v486_v25 = vld [vmem:[%s634_s1 + $0xb8] sm:$0xff]  }
   0xa   :  { %444 = vmatprep.subr.bf16.mxu1 %v469_v9  ;;  %289 = vmatprep.mubr.bf16.mxu0 %v485_v22  ;;  %v489_v27 = vld [vmem:[%s635_s0 + $0x1c] ss:$12 sps:$4 sm:$0xff]   ;;  %v488_v28 = vld [vmem:[%s635_s0 + $0x20] ss:$12 sps:$4 sm:$0xff]   ;;  %v491_v29 = vld [vmem:[%s635_s0 + $0x18] ss:$12 sps:$4 sm:$0xff]  }
   0xb   :  { %407 = vmatpush3.bf16.msra.mxu0 %v467_v7  ;;  %456 = vmatprep.mubr.bf16.mxu1 %v487_v24  ;;  %v371_v32 = vld [vmem:[%s636_s2] ss:$0 sm:$0xff]  ;;  %v356_v45 = vld [vmem:[%s637_s3 + $0x8] sm:$0xff]  ;;  %v357_v56 = vld [vmem:[%s637_s3 + $0x10] sm:$0xff] }
   0xc   :  { %408 = vmatprep.subr.bf16.mxu0 %v468_v8  ;;  %v355_v40 = vld [vmem:[%s637_s3] sm:$0xff]  ;;  %v358_v59 = vld [vmem:[%s637_s3 + $0x18] sm:$0xff] }
   0xd   :  { %445 = vmatpush3.bf16.msra.mxu1 %v469_v9 }
   0xe   :  { %446 = vmatprep.subr.bf16.mxu1 %v472_v12 }
   0xf   :  { %409 = vmatpush3.bf16.msra.mxu0 %v470_v10 }
  0x10   :  { %410 = vmatprep.subr.bf16.mxu0 %v471_v11 }
  0x11   :  { %447 = vmatpush3.bf16.msra.mxu1 %v472_v12 }
  0x12   :  { %448 = vmatprep.subr.bf16.mxu1 %v475_v14 }
  0x13   :  { %411 = vmatpush3.bf16.msra.mxu0 %v473_v13 }
  0x14   :  { %412 = vmatprep.subr.bf16.mxu0 %v474_v15 }
  0x15   :  { %449 = vmatpush3.bf16.msra.mxu1 %v475_v14 }
  0x16   :  { %450 = vmatprep.subr.bf16.mxu1 %v478_v17 }
  0x17   :  { %413 = vmatpush3.bf16.msra.mxu0 %v476_v16 }
  0x18   :  { %414 = vmatprep.subr.bf16.mxu0 %v477_v18 }
  0x19   :  { %451 = vmatpush3.bf16.msra.mxu1 %v478_v17 }
  0x1a   :  { %452 = vmatprep.subr.bf16.mxu1 %v481_v21 }
  0x1b   :  { %415 = vmatpush3.bf16.msra.mxu0 %v479_v19 }
  0x1c   :  { %416 = vmatprep.subr.bf16.mxu0 %v480_v20 }
  0x1d   :  { %453 = vmatpush3.bf16.msra.mxu1 %v481_v21 }
  0x1e   :  { %454 = vmatprep.subr.bf16.mxu1 %v486_v25 }
  0x1f   :  { %417 = vmatpush3.bf16.msra.mxu0 %v482_v23 }
  0x21   :  { %455 = vmatpush3.bf16.msra.mxu1 %v486_v25 }
  0x22   :  { %290 = vmatmul.mubr.bf16.vlgmr.msra.gmra.mrb[0].mxu0 %v483_v26 }
  0x23   :  { %297 = vmatprep.mubr.bf16.mxu0 %v489_v27 }
  0x24   :  { %457 = vmatmul.mubr.bf16.vlgmr.msra.gmra.mrb[0].mxu1 %v488_v28 }
  0x2a   :  { %298 = vmatmul.mubr.bf16.gmra.mrb[4].mxu0 %v491_v29 }
  0xf5   :  { %v418_v30 = vpop.f32.mrb[0].mxu0 }
  0xf6   :  { %v419_v31 = vpop.f32.mrb[1].mxu0 }
  0xf7   :  { %v420_v33 = vadd.f32 %v419_v31, %v418_v30  ;;  %v421_v34 = vpop.f32.mrb[2].mxu0  ;;  %v458_v36 = vpop.f32.mrb[0].mxu1 }
  0xf8   :  { %v422_v35 = vpop.f32.mrb[3].mxu0  ;;  %v340_v39 = vpop.f32.mrb[1].mxu1 }
  0xf9   :  { %v423_v37 = vadd.f32 %v422_v35, %v421_v34  ;;  %v292_v38 = vadd.f32 %v420_v33, %v371_v32  ;;  %v459_v41 = vpop.f32.mrb[2].mxu1 }
  0xfa   :  { %v343_v44 = vpop.f32.mrb[3].mxu1 }
  0xfb   :  { %v341_v42 = vadd.f32 %v340_v39, %v292_v38  ;;  %v295_v43 = vadd.f32 %v423_v37, %v371_v32 }
  0xfd   :  { %v359_v46 = vadd.f32 %v355_v40, %v341_v42  ;;  %v344_v47 = vadd.f32 %v343_v44, %v295_v43  ;;  %v424_v48 = vpop.f32.mrb[4].mxu0 }
  0xfe   :  { %v425_v49 = vpop.f32.mrb[5].mxu0 }
  0xff   :  { %363 = vst [vmem:[%s638_s4] sm:$0xff] %v359_v46  ;;  %v360_v50 = vadd.f32 %v356_v45, %v344_v47  ;;  %v426_v51 = vadd.f32 %v425_v49, %v424_v48  ;;  %v427_v52 = vpop.f32.mrb[6].mxu0 }
 0x100   :  { %v428_v53 = vpop.f32.mrb[7].mxu0 }
 0x101   :  { %364 = vst [vmem:[%s638_s4 + $0x8] sm:$0xff] %v360_v50  ;;  %v300_v54 = vadd.f32 %v426_v51, %v371_v32  ;;  %v429_v55 = vadd.f32 %v428_v53, %v427_v52 }
 0x103   :  { %v349_v57 = vadd.f32 %v458_v36, %v300_v54  ;;  %v303_v58 = vadd.f32 %v429_v55, %v371_v32 }
 0x105   :  { %v361_v60 = vadd.f32 %v357_v56, %v349_v57  ;;  %v352_v61 = vadd.f32 %v459_v41, %v303_v58 }
 0x107   :  { %365 = vst [vmem:[%s638_s4 + $0x10] sm:$0xff] %v361_v60  ;;  %v362_v62 = vadd.f32 %v358_v59, %v352_v61 }
 0x109   :  { %366 = vst [vmem:[%s638_s4 + $0x18] sm:$0xff] %v362_v62 }

// kernel: forward.19
= control target key start
LH: loop header
LB: loop body
LE: loop exit
PB: predicated region body
PF: predicated region fallthrough
CT: control target
= control target key end

     0   :  { %s279_s1 = inlined_call_operand.vmem [shape: bf16[128,128], index: 1, kind: input, shape index: {}]   ;;  %s280_s0 = inlined_call_operand.vmem [shape: bf16[32,128], index: 0, kind: input, shape index: {}]   ;;  %s281_s2 = inlined_call_operand.vmem [shape: f32[1,128], index: 2, kind: input, shape index: {}]   ;;  %s282_s3 = inlined_call_operand.vmem [shape: f32[32,128], index: 3, kind: output, shape index: {}]  }
   0x1   :  { %v204_v0 = vld [vmem:[%s279_s1] sm:$0xff]   ;;  %v205_v1 = vld [vmem:[%s279_s1 + $0x8] sm:$0xff]   ;;  %v206_v2 = vld [vmem:[%s279_s1 + $0x10] sm:$0xff]  }
   0x2   :  { %184 = vmatprep.subr.bf16.mxu0 %v204_v0  ;;  %v207_v3 = vld [vmem:[%s279_s1 + $0x18] sm:$0xff]   ;;  %v212_v4 = vld [vmem:[%s280_s0] sm:$0xff]   ;;  %v209_v6 = vld [vmem:[%s279_s1 + $0x28] sm:$0xff]  }
   0x3   :  { %185 = vmatpush3.bf16.msra.mxu0 %v204_v0  ;;  %200 = vmatprep.mubr.bf16.mxu0 %v212_v4  ;;  %v208_v5 = vld [vmem:[%s279_s1 + $0x20] sm:$0xff]   ;;  %v210_v7 = vld [vmem:[%s279_s1 + $0x30] sm:$0xff]   ;;  %v211_v8 = vld [vmem:[%s279_s1 + $0x38] sm:$0xff]  }
   0x4   :  { %186 = vmatprep.subr.bf16.mxu0 %v205_v1  ;;  %v213_v9 = vld [vmem:[%s280_s0 + $0x8] sm:$0xff]   ;;  %v163_v10 = vld [vmem:[%s281_s2] ss:$0 sm:$0xff] }
   0x7   :  { %187 = vmatpush3.bf16.msra.mxu0 %v205_v1 }
   0x8   :  { %188 = vmatprep.subr.bf16.mxu0 %v206_v2 }
   0xb   :  { %189 = vmatpush3.bf16.msra.mxu0 %v206_v2 }
   0xc   :  { %190 = vmatprep.subr.bf16.mxu0 %v207_v3 }
   0xf   :  { %191 = vmatpush3.bf16.msra.mxu0 %v207_v3 }
  0x10   :  { %192 = vmatprep.subr.bf16.mxu0 %v208_v5 }
  0x13   :  { %193 = vmatpush3.bf16.msra.mxu0 %v208_v5 }
  0x14   :  { %194 = vmatprep.subr.bf16.mxu0 %v209_v6 }
  0x17   :  { %195 = vmatpush3.bf16.msra.mxu0 %v209_v6 }
  0x18   :  { %196 = vmatprep.subr.bf16.mxu0 %v210_v7 }
  0x1b   :  { %197 = vmatpush3.bf16.msra.mxu0 %v210_v7 }
  0x1c   :  { %198 = vmatprep.subr.bf16.mxu0 %v211_v8 }
  0x1f   :  { %199 = vmatpush3.bf16.msra.mxu0 %v211_v8 }
  0x22   :  { %201 = vmatmul.mubr.bf16.vlgmr.msra.gmra.mrb[0].mxu0 %v213_v9 }
  0xf5   :  { %v202_v11 = vpop.f32.mrb[0].mxu0 }
  0xf6   :  { %v145_v12 = vadd.f32 %v202_v11, %v163_v10  ;;  %v136_v13 = vpop.f32.mrb[1].mxu0 }
  0xf7   :  { %v137_v14 = vadd.f32 %v163_v10, %v136_v13  ;;  %v203_v15 = vpop.f32.mrb[2].mxu0 }
  0xf8   :  { %v153_v16 = vmax.f32 %v145_v12, 0.0  ;;  %v148_v17 = vadd.f32 %v203_v15, %v163_v10  ;;  %v139_v18 = vpop.f32.mrb[3].mxu0 }
  0xf9   :  { %v151_v19 = vmax.f32 %v137_v14, 0.0  ;;  %v140_v20 = vadd.f32 %v163_v10, %v139_v18 }
  0xfa   :  { %157 = vst [vmem:[%s282_s3 + $0x10] sm:$0xff] %v153_v16  ;;  %v154_v21 = vmax.f32 %v148_v17, 0.0 }
  0xfb   :  { %155 = vst [vmem:[%s282_s3] sm:$0xff] %v151_v19  ;;  %v152_v22 = vmax.f32 %v140_v20, 0.0 }
  0xfc   :  { %158 = vst [vmem:[%s282_s3 + $0x18] sm:$0xff] %v154_v21 }
  0xfd   :  { %156 = vst [vmem:[%s282_s3 + $0x8] sm:$0xff] %v152_v22 }

// kernel: forward.21
= control target key start
LH: loop header
LB: loop body
LE: loop exit
PB: predicated region body
PF: predicated region fallthrough
CT: control target
= control target key end

     0   :  { %s1960_s12 = smov 0   ;;  %s1962_s13 = smov 0   ;;  %s2233_s0 = inlined_call_operand.vmem [shape: bf16[512,512], index: 0, kind: input, shape index: {}]   ;;  %s2234_s1 = inlined_call_operand.vmem [shape: bf16[512,128], index: 1, kind: input, shape index: {}]   ;;  %s2235_s2 = inlined_call_operand.vmem [shape: f32[1,128], index: 2, kind: input, shape index: {}]   ;;  %s2236_s3 = inlined_call_operand.vmem [shape: f32[512,128], index: 3, kind: output, shape index: {}]  }
   0x1   :  { %s1964_s14 = smov 0  }
   0x2 LB: > { %s25_s15 = sadd.s32 1, %s1934_s13  ;;  %p1370_p0 = scmp.ge.s32.totalorder %s1938_s14, 1  ;;  %s1938_s14 = sphi %s1964_s14, %s13_s14   ;;  %s1934_s13 = sphi %s1962_s13, %s2238_s13   ;;  %s1930_s12 = sphi %s1960_s12, %s2237_s12  }
   0x3   : > { %p27_p1 = scmp.ge.s32.totalorder %s25_s15, 2  ;;  %p170_p2 = scmp.lt.s32.totalorder %s1938_s14, 3 }
   0x5   : > { %s2240_s15 = smov (%p27_p1, %s25_s15), 0  ;;  %p171_p3 = pnand %p1370_p0, %p170_p2 }
   0x6   : > { %v1724_v0 = vld [vmem:[%s2234_s1 + $0x40] sm:$0xff] (!%p171_p3)   ;;  %v1728_v4 = vld [vmem:[%s2234_s1 + $0x48] sm:$0xff] (!%p171_p3)   ;;  %v1732_v8 = vld [vmem:[%s2234_s1 + $0x50] sm:$0xff] (!%p171_p3)   ;;  %s1371_s25 = sshll.u32 (!%p171_p3), %s1930_s12, 5 }
   0x7   : > { %174 = sbr.rel (%p171_p3) target bundleno = 394 (0x18a), region = 32  ;;  %v1725_v1 = vld [vmem:[%s2234_s1 + $0xc0] sm:$0xff] (!%p171_p3)   ;;  %1476 = vmatprep.subr.bf16.mxu0 (!%p171_p3), %v1724_v0  ;;  %v1729_v5 = vld [vmem:[%s2234_s1 + $0xc8] sm:$0xff] (!%p171_p3)   ;;  %v1733_v9 = vld [vmem:[%s2234_s1 + $0xd0] sm:$0xff] (!%p171_p3)   ;;  %p206_p4 = scmp.lt.s32.totalorder (!%p171_p3), %s1371_s25, 63 }
   0x8   : > { %v1726_v2 = vld [vmem:[%s2234_s1] sm:$0xff] (!%p171_p3)   ;;  %1588 = vmatprep.subr.bf16.mxu1 (!%p171_p3), %v1725_v1  ;;  %v1730_v6 = vld [vmem:[%s2234_s1 + $0x8] sm:$0xff] (!%p171_p3)   ;;  %v1734_v10 = vld [vmem:[%s2234_s1 + $0x10] sm:$0xff] (!%p171_p3)  }
   0x9   : > { %v1727_v3 = vld [vmem:[%s2234_s1 + $0x80] sm:$0xff] (!%p171_p3)   ;;  %1477 = vmatpush3.bf16.msra.mxu0 (!%p171_p3), %v1726_v2  ;;  %v1731_v7 = vld [vmem:[%s2234_s1 + $0x88] sm:$0xff] (!%p171_p3)   ;;  %v1735_v11 = vld [vmem:[%s2234_s1 + $0x90] sm:$0xff] (!%p171_p3)  }
   0xa   : > { %1589 = vmatpush3.bf16.msra.mxu1 (!%p171_p3), %v1727_v3  ;;  %1478 = vmatprep.subr.bf16.mxu0 (!%p171_p3), %v1728_v4  ;;  %v1736_v12 = vld [vmem:[%s2234_s1 + $0x58] sm:$0xff] (!%p171_p3)   ;;  %v1740_v16 = vld [vmem:[%s2234_s1 + $0x60] sm:$0xff] (!%p171_p3)   ;;  %v1744_v20 = vld [vmem:[%s2234_s1 + $0x68] sm:$0xff] (!%p171_p3)  }
   0xb   : > { %1590 = vmatprep.subr.bf16.mxu1 (!%p171_p3), %v1729_v5  ;;  %v1737_v13 = vld [vmem:[%s2234_s1 + $0xd8] sm:$0xff] (!%p171_p3)   ;;  %v1741_v17 = vld [vmem:[%s2234_s1 + $0xe0] sm:$0xff] (!%p171_p3)   ;;  %v1745_v21 = vld [vmem:[%s2234_s1 + $0xe8] sm:$0xff] (!%p171_p3)  }
   0xc   : > { %v1738_v14 = vld [vmem:[%s2234_s1 + $0x18] sm:$0xff] (!%p171_p3)   ;;  %v1742_v18 = vld [vmem:[%s2234_s1 + $0x20] sm:$0xff] (!%p171_p3)   ;;  %v1746_v22 = vld [vmem:[%s2234_s1 + $0x28] sm:$0xff] (!%p171_p3)  }
   0xd   : > { %1479 = vmatpush3.bf16.msra.mxu0 (!%p171_p3), %v1730_v6  ;;  %v1739_v15 = vld [vmem:[%s2234_s1 + $0x98] sm:$0xff] (!%p171_p3)   ;;  %v1743_v19 = vld [vmem:[%s2234_s1 + $0xa0] sm:$0xff] (!%p171_p3)   ;;  %v1747_v23 = vld [vmem:[%s2234_s1 + $0xa8] sm:$0xff] (!%p171_p3)  }
   0xe   : > { %1591 = vmatpush3.bf16.msra.mxu1 %v1731_v7  ;;  %1480 = vmatprep.subr.bf16.mxu0 %v1732_v8  ;;  %s2242_s25 = smov (!%p206_p4, %s1371_s25), 63  ;;  %v1748_v24 = vld [vmem:[%s2234_s1 + $0x70] sm:$0xff]   ;;  %v1752_v28 = vld [vmem:[%s2234_s1 + $0x78] sm:$0xff]  }
   0xf   : > { %1592 = vmatprep.subr.bf16.mxu1 %v1733_v9  ;;  %v1749_v25 = vld [vmem:[%s2234_s1 + $0xf0] sm:$0xff]   ;;  %s1475_s24 = sshll.u32 %s2242_s25, 4  ;;  %v1753_v29 = vld [vmem:[%s2234_s1 + $0xf8] sm:$0xff]   ;;  %s1375_s17 = sshll.u32 %s2242_s25, 3 }
  0x10   : > { %v1750_v26 = vld [vmem:[%s2234_s1 + $0x30] sm:$0xff]   ;;  %s2077_s12 = scalar_lea.vmem %s2233_s0, %s1475_s24  ;;  %v1754_v30 = vld [vmem:[%s2234_s1 + $0x38] sm:$0xff]   ;;  %s2162_s20 = scalar_lea.vmem %s2236_s3, %s1375_s17 }
  0x11   : > { %1481 = vmatpush3.bf16.msra.mxu0 %v1734_v10  ;;  %v1751_v27 = vld [vmem:[%s2234_s1 + $0xb0] sm:$0xff]   ;;  %v1755_v31 = vld [vmem:[%s2234_s1 + $0xb8] sm:$0xff]  }
  0x12   : > { %1593 = vmatpush3.bf16.msra.mxu1 %v1735_v11  ;;  %1482 = vmatprep.subr.bf16.mxu0 %v1736_v12  ;;  %v1756_v32 = vld [vmem:[%s2077_s12] ss:$16 sps:$4 sm:$0xff]   ;;  %v1758_v33 = vld [vmem:[%s2077_s12 + $0x4] ss:$16 sps:$4 sm:$0xff]   ;;  %v1759_v34 = vld [vmem:[%s2077_s12 + $0x8] ss:$16 sps:$4 sm:$0xff]  }
  0x13   : > { %1594 = vmatprep.subr.bf16.mxu1 %v1737_v13  ;;  %v1761_v35 = vld [vmem:[%s2077_s12 + $0xc] ss:$16 sps:$4 sm:$0xff]   ;;  %908 = vmatprep.mubr.bf16.mxu0 %v1758_v33  ;;  %v1762_v36 = vld [vmem:[%s2077_s12 + $0x24] ss:$16 sps:$4 sm:$0xff]   ;;  %v1766_v38 = vld [vmem:[%s2077_s12 + $0x20] ss:$16 sps:$4 sm:$0xff]  }
  0x14   : > { %1069 = vmatprep.mubr.bf16.mxu1 %v1761_v35  ;;  %v1764_v37 = vld [vmem:[%s2077_s12 + $0x2c] ss:$16 sps:$4 sm:$0xff]   ;;  %v1767_v39 = vld [vmem:[%s2077_s12 + $0x28] ss:$16 sps:$4 sm:$0xff]   ;;  %v1768_v40 = vld [vmem:[%s2077_s12 + $0x44] ss:$16 sps:$4 sm:$0xff]  }
  0x15   : > { %1483 = vmatpush3.bf16.msra.mxu0 %v1738_v14  ;;  %v1770_v41 = vld [vmem:[%s2077_s12 + $0x4c] ss:$16 sps:$4 sm:$0xff]   ;;  %v1772_v42 = vld [vmem:[%s2077_s12 + $0x40] ss:$16 sps:$4 sm:$0xff]   ;;  %v1773_v43 = vld [vmem:[%s2077_s12 + $0x48] ss:$16 sps:$4 sm:$0xff]  }
  0x16   : > { %1595 = vmatpush3.bf16.msra.mxu1 %v1739_v15  ;;  %1484 = vmatprep.subr.bf16.mxu0 %v1740_v16  ;;  %v1774_v44 = vld [vmem:[%s2077_s12 + $0x64] ss:$16 sps:$4 sm:$0xff]   ;;  %v1776_v45 = vld [vmem:[%s2077_s12 + $0x6c] ss:$16 sps:$4 sm:$0xff]   ;;  %v1778_v46 = vld [vmem:[%s2077_s12 + $0x60] ss:$16 sps:$4 sm:$0xff]  }
  0x17   : > { %1596 = vmatprep.subr.bf16.mxu1 %v1741_v17  ;;  %v1779_v47 = vld [vmem:[%s2077_s12 + $0x68] ss:$16 sps:$4 sm:$0xff]   ;;  %v1780_v48 = vld [vmem:[%s2077_s12 + $0x84] ss:$16 sps:$4 sm:$0xff]   ;;  %v1782_v49 = vld [vmem:[%s2077_s12 + $0x8c] ss:$16 sps:$4 sm:$0xff]  }
  0x18   : > { %v1784_v50 = vld [vmem:[%s2077_s12 + $0x80] ss:$16 sps:$4 sm:$0xff]   ;;  %v1785_v51 = vld [vmem:[%s2077_s12 + $0x88] ss:$16 sps:$4 sm:$0xff]   ;;  %v1786_v52 = vld [vmem:[%s2077_s12 + $0xa4] ss:$16 sps:$4 sm:$0xff]  }
  0x19   : > { %1485 = vmatpush3.bf16.msra.mxu0 %v1742_v18  ;;  %v1788_v53 = vld [vmem:[%s2077_s12 + $0xac] ss:$16 sps:$4 sm:$0xff]   ;;  %v1790_v54 = vld [vmem:[%s2077_s12 + $0xa0] ss:$16 sps:$4 sm:$0xff]   ;;  %v1791_v55 = vld [vmem:[%s2077_s12 + $0xa8] ss:$16 sps:$4 sm:$0xff]  }
  0x1a   : > { %1597 = vmatpush3.bf16.msra.mxu1 %v1743_v19  ;;  %1486 = vmatprep.subr.bf16.mxu0 %v1744_v20  ;;  %v1792_v56 = vld [vmem:[%s2077_s12 + $0xc4] ss:$16 sps:$4 sm:$0xff]   ;;  %v1794_v57 = vld [vmem:[%s2077_s12 + $0xcc] ss:$16 sps:$4 sm:$0xff]   ;;  %v1796_v58 = vld [vmem:[%s2077_s12 + $0xc0] ss:$16 sps:$4 sm:$0xff]  }
  0x1b   : > { %1598 = vmatprep.subr.bf16.mxu1 %v1745_v21  ;;  %v1797_v59 = vld [vmem:[%s2077_s12 + $0xc8] ss:$16 sps:$4 sm:$0xff]   ;;  %v1798_v60 = vld [vmem:[%s2077_s12 + $0xe4] ss:$16 sps:$4 sm:$0xff]   ;;  %v1800_v61 = vld [vmem:[%s2077_s12 + $0xec] ss:$16 sps:$4 sm:$0xff]  }
  0x1c   : > { %v1802_v62 = vld [vmem:[%s2077_s12 + $0xe0] ss:$16 sps:$4 sm:$0xff]   ;;  %v1803_v63 = vld [vmem:[%s2077_s12 + $0xe8] ss:$16 sps:$4 sm:$0xff]   ;;  %v1804_v0 = vld [vmem:[%s2077_s12 + $0x104] ss:$16 sps:$4 sm:$0xff]  }
  0x1d   : > { %1487 = vmatpush3.bf16.msra.mxu0 %v1746_v22  ;;  %v1806_v1 = vld [vmem:[%s2077_s12 + $0x10c] ss:$16 sps:$4 sm:$0xff]   ;;  %v1808_v2 = vld [vmem:[%s2077_s12 + $0x100] ss:$16 sps:$4 sm:$0xff]   ;;  %v1809_v3 = vld [vmem:[%s2077_s12 + $0x108] ss:$16 sps:$4 sm:$0xff]  }
  0x1e   : > { %1599 = vmatpush3.bf16.msra.mxu1 %v1747_v23  ;;  %1488 = vmatprep.subr.bf16.mxu0 %v1748_v24  ;;  %v1810_v4 = vld [vmem:[%s2077_s12 + $0x124] ss:$16 sps:$4 sm:$0xff]   ;;  %v1812_v5 = vld [vmem:[%s2077_s12 + $0x12c] ss:$16 sps:$4 sm:$0xff]   ;;  %v1814_v6 = vld [vmem:[%s2077_s12 + $0x120] ss:$16 sps:$4 sm:$0xff]  }
  0x1f   : > { %1600 = vmatprep.subr.bf16.mxu1 %v1749_v25  ;;  %v1815_v7 = vld [vmem:[%s2077_s12 + $0x128] ss:$16 sps:$4 sm:$0xff]   ;;  %v1816_v8 = vld [vmem:[%s2077_s12 + $0x144] ss:$16 sps:$4 sm:$0xff]   ;;  %v1818_v9 = vld [vmem:[%s2077_s12 + $0x14c] ss:$16 sps:$4 sm:$0xff]  }
  0x20   : > { %v1820_v10 = vld [vmem:[%s2077_s12 + $0x140] ss:$16 sps:$4 sm:$0xff]   ;;  %v1821_v11 = vld [vmem:[%s2077_s12 + $0x148] ss:$16 sps:$4 sm:$0xff]   ;;  %v1822_v12 = vld [vmem:[%s2077_s12 + $0x164] ss:$16 sps:$4 sm:$0xff]  }
  0x21   : > { %1489 = vmatpush3.bf16.msra.mxu0 %v1750_v26  ;;  %v1824_v13 = vld [vmem:[%s2077_s12 + $0x16c] ss:$16 sps:$4 sm:$0xff]   ;;  %v1826_v14 = vld [vmem:[%s2077_s12 + $0x160] ss:$16 sps:$4 sm:$0xff]   ;;  %v1827_v15 = vld [vmem:[%s2077_s12 + $0x168] ss:$16 sps:$4 sm:$0xff]  }
  0x22   : > { %1601 = vmatpush3.bf16.msra.mxu1 %v1751_v27  ;;  %1490 = vmatprep.subr.bf16.mxu0 %v1752_v28  ;;  %v1828_v16 = vld [vmem:[%s2077_s12 + $0x184] ss:$16 sps:$4 sm:$0xff]   ;;  %v1830_v17 = vld [vmem:[%s2077_s12 + $0x18c] ss:$16 sps:$4 sm:$0xff]   ;;  %v1832_v18 = vld [vmem:[%s2077_s12 + $0x180] ss:$16 sps:$4 sm:$0xff]  }
  0x23   : > { %1602 = vmatprep.subr.bf16.mxu1 %v1753_v29  ;;  %v1833_v19 = vld [vmem:[%s2077_s12 + $0x188] ss:$16 sps:$4 sm:$0xff]   ;;  %v1834_v20 = vld [vmem:[%s2077_s12 + $0x1a4] ss:$16 sps:$4 sm:$0xff]   ;;  %v1836_v21 = vld [vmem:[%s2077_s12 + $0x1ac] ss:$16 sps:$4 sm:$0xff]  }
  0x24   : > { %v1838_v22 = vld [vmem:[%s2077_s12 + $0x1a0] ss:$16 sps:$4 sm:$0xff]   ;;  %v1839_v23 = vld [vmem:[%s2077_s12 + $0x1a8] ss:$16 sps:$4 sm:$0xff]   ;;  %v1840_v24 = vld [vmem:[%s2077_s12 + $0x1c4] ss:$16 sps:$4 sm:$0xff]  }
  0x25   : > { %1491 = vmatpush3.bf16.msra.mxu0 %v1754_v30  ;;  %v1842_v25 = vld [vmem:[%s2077_s12 + $0x1cc] ss:$16 sps:$4 sm:$0xff]   ;;  %v1844_v26 = vld [vmem:[%s2077_s12 + $0x1c0] ss:$16 sps:$4 sm:$0xff]   ;;  %v1845_v27 = vld [vmem:[%s2077_s12 + $0x1c8] ss:$16 sps:$4 sm:$0xff]  }
  0x26   : > { %1603 = vmatpush3.bf16.msra.mxu1 %v1755_v31  ;;  %v1846_v28 = vld [vmem:[%s2077_s12 + $0x1e4] ss:$16 sps:$4 sm:$0xff]   ;;  %v1848_v29 = vld [vmem:[%s2077_s12 + $0x1ec] ss:$16 sps:$4 sm:$0xff]   ;;  %v1850_v30 = vld [vmem:[%s2077_s12 + $0x1e0] ss:$16 sps:$4 sm:$0xff]  }
  0x27   : > { %v1851_v31 = vld [vmem:[%s2077_s12 + $0x1e8] ss:$16 sps:$4 sm:$0xff]  }
  0x28   : > { %909 = vmatmul.mubr.bf16.vlgmr.msra.gmra.mrb[0].mxu0 %v1756_v32 }
  0x29   : > { %1070 = vmatmul.mubr.bf16.vlgmr.msra.gmra.mrb[0].mxu1 %v1759_v34  ;;  %916 = vmatprep.mubr.bf16.mxu0 %v1762_v36  ;;  %v2152_v34 = vld [vmem:[%s2235_s2] ss:$0 sm:$0xff] }
  0x2a   : > { %1077 = vmatprep.mubr.bf16.mxu1 %v1764_v37 }
  0x30   : > { %917 = vmatmul.mubr.bf16.gmra.mrb[4].mxu0 %v1766_v38 }
  0x31   : > { %1078 = vmatmul.mubr.bf16.gmra.mrb[4].mxu1 %v1767_v39  ;;  %924 = vmatprep.mubr.bf16.mxu0 %v1768_v40 }
  0x32   : > { %1085 = vmatprep.mubr.bf16.mxu1 %v1770_v41 }
  0x38   : > { %925 = vmatmul.mubr.bf16.gmra.mrb[8].mxu0 %v1772_v42 }
  0x39   : > { %1086 = vmatmul.mubr.bf16.gmra.mrb[8].mxu1 %v1773_v43  ;;  %932 = vmatprep.mubr.bf16.mxu0 %v1774_v44 }
  0x3a   : > { %1093 = vmatprep.mubr.bf16.mxu1 %v1776_v45 }
  0x40   : > { %933 = vmatmul.mubr.bf16.gmra.mrb[12].mxu0 %v1778_v46 }
  0x41   : > { %1094 = vmatmul.mubr.bf16.gmra.mrb[12].mxu1 %v1779_v47  ;;  %940 = vmatprep.mubr.bf16.mxu0 %v1780_v48 }
  0x42   : > { %1101 = vmatprep.mubr.bf16.mxu1 %v1782_v49 }
  0x48   : > { %941 = vmatmul.mubr.bf16.gmra.mrb[16].mxu0 %v1784_v50 }
  0x49   : > { %1102 = vmatmul.mubr.bf16.gmra.mrb[16].mxu1 %v1785_v51  ;;  %948 = vmatprep.mubr.bf16.mxu0 %v1786_v52 }
  0x4a   : > { %1109 = vmatprep.mubr.bf16.mxu1 %v1788_v53 }
  0x50   : > { %949 = vmatmul.mubr.bf16.gmra.mrb[20].mxu0 %v1790_v54 }
  0x51   : > { %1110 = vmatmul.mubr.bf16.gmra.mrb[20].mxu1 %v1791_v55  ;;  %956 = vmatprep.mubr.bf16.mxu0 %v1792_v56 }
  0x52   : > { %1117 = vmatprep.mubr.bf16.mxu1 %v1794_v57 }
  0x58   : > { %957 = vmatmul.mubr.bf16.gmra.mrb[24].mxu0 %v1796_v58 }
  0x59   : > { %1118 = vmatmul.mubr.bf16.gmra.mrb[24].mxu1 %v1797_v59  ;;  %964 = vmatprep.mubr.bf16.mxu0 %v1798_v60 }
  0x5a   : > { %1125 = vmatprep.mubr.bf16.mxu1 %v1800_v61 }
  0x60   : > { %965 = vmatmul.mubr.bf16.gmra.mrb[28].mxu0 %v1802_v62 }
  0x61   : > { %1126 = vmatmul.mubr.bf16.gmra.mrb[28].mxu1 %v1803_v63  ;;  %972 = vmatprep.mubr.bf16.mxu0 %v1804_v0 }
  0x62   : > { %1133 = vmatprep.mubr.bf16.mxu1 %v1806_v1 }
  0x68   : > { %973 = vmatmul.mubr.bf16.gmra.mrb[32].mxu0 %v1808_v2 }
  0x69   : > { %1134 = vmatmul.mubr.bf16.gmra.mrb[32].mxu1 %v1809_v3  ;;  %980 = vmatprep.mubr.bf16.mxu0 %v1810_v4 }
  0x6a   : > { %1141 = vmatprep.mubr.bf16.mxu1 %v1812_v5 }
  0x70   : > { %981 = vmatmul.mubr.bf16.gmra.mrb[36].mxu0 %v1814_v6 }
  0x71   : > { %1142 = vmatmul.mubr.bf16.gmra.mrb[36].mxu1 %v1815_v7  ;;  %988 = vmatprep.mubr.bf16.mxu0 %v1816_v8 }
  0x72   : > { %1149 = vmatprep.mubr.bf16.mxu1 %v1818_v9 }
  0x78   : > { %989 = vmatmul.mubr.bf16.gmra.mrb[40].mxu0 %v1820_v10 }
  0x79   : > { %1150 = vmatmul.mubr.bf16.gmra.mrb[40].mxu1 %v1821_v11  ;;  %996 = vmatprep.mubr.bf16.mxu0 %v1822_v12 }
  0x7a   : > { %1157 = vmatprep.mubr.bf16.mxu1 %v1824_v13 }
  0x80   : > { %997 = vmatmul.mubr.bf16.gmra.mrb[44].mxu0 %v1826_v14 }
  0x81   : > { %1158 = vmatmul.mubr.bf16.gmra.mrb[44].mxu1 %v1827_v15  ;;  %1004 = vmatprep.mubr.bf16.mxu0 %v1828_v16 }
  0x82   : > { %1165 = vmatprep.mubr.bf16.mxu1 %v1830_v17 }
  0x88   : > { %1005 = vmatmul.mubr.bf16.gmra.mrb[48].mxu0 %v1832_v18 }
  0x89   : > { %1166 = vmatmul.mubr.bf16.gmra.mrb[48].mxu1 %v1833_v19  ;;  %1012 = vmatprep.mubr.bf16.mxu0 %v1834_v20 }
  0x8a   : > { %1173 = vmatprep.mubr.bf16.mxu1 %v1836_v21 }
  0x90   : > { %1013 = vmatmul.mubr.bf16.gmra.mrb[52].mxu0 %v1838_v22 }
  0x91   : > { %1174 = vmatmul.mubr.bf16.gmra.mrb[52].mxu1 %v1839_v23  ;;  %1020 = vmatprep.mubr.bf16.mxu0 %v1840_v24 }
  0x92   : > { %1181 = vmatprep.mubr.bf16.mxu1 %v1842_v25 }
  0x98   : > { %1021 = vmatmul.mubr.bf16.gmra.mrb[56].mxu0 %v1844_v26 }
  0x99   : > { %1182 = vmatmul.mubr.bf16.gmra.mrb[56].mxu1 %v1845_v27  ;;  %1028 = vmatprep.mubr.bf16.mxu0 %v1846_v28 }
  0x9a   : > { %1189 = vmatprep.mubr.bf16.mxu1 %v1848_v29 }
  0xa0   : > { %1029 = vmatmul.mubr.bf16.gmra.mrb[60].mxu0 %v1850_v30 }
  0xa1   : > { %1190 = vmatmul.mubr.bf16.gmra.mrb[60].mxu1 %v1851_v31 }
  0xfb   : > { %v1492_v32 = vpop.f32.mrb[0].mxu0 }
  0xfc   : > { %v1604_v33 = vpop.f32.mrb[0].mxu1  ;;  %v1493_v35 = vpop.f32.mrb[1].mxu0 }
  0xfd   : > { %v1494_v36 = vadd.f32 %v1493_v35, %v1492_v32  ;;  %v1605_v37 = vpop.f32.mrb[1].mxu1  ;;  %v1495_v38 = vpop.f32.mrb[2].mxu0 }
  0xfe   : > { %v1606_v39 = vadd.f32 %v1605_v37, %v1604_v33  ;;  %v1607_v40 = vpop.f32.mrb[2].mxu1  ;;  %v1496_v41 = vpop.f32.mrb[3].mxu0 }
  0xff   : > { %v911_v42 = vadd.f32 %v1494_v36, %v2152_v34  ;;  %v1497_v43 = vadd.f32 %v1496_v41, %v1495_v38  ;;  %v1608_v44 = vpop.f32.mrb[3].mxu1 }
 0x100   : > { %v1609_v45 = vadd.f32 %v1608_v44, %v1607_v40 }
 0x101   : > { %v1072_v46 = vadd.f32 %v1606_v39, %v911_v42  ;;  %v914_v47 = vadd.f32 %v1497_v43, %v2152_v34 }
 0x103   : > { %1852 = vtanh.f32 %v1072_v46  ;;  %v1075_v48 = vadd.f32 %v1609_v45, %v914_v47  ;;  %v1498_v49 = vpop.f32.mrb[4].mxu0 }
 0x104   : > { %v1610_v50 = vpop.f32.mrb[4].mxu1  ;;  %v1499_v51 = vpop.f32.mrb[5].mxu0 }
 0x105   : > { %1854 = vtanh.f32 %v1075_v48  ;;  %v1500_v52 = vadd.f32 %v1499_v51, %v1498_v49  ;;  %v1611_v53 = vpop.f32.mrb[5].mxu1  ;;  %v1501_v54 = vpop.f32.mrb[6].mxu0 }
 0x106   : > { %v1612_v55 = vadd.f32 %v1611_v53, %v1610_v50  ;;  %v1613_v56 = vpop.f32.mrb[6].mxu1  ;;  %v1502_v57 = vpop.f32.mrb[7].mxu0 }
 0x107   : > { %v919_v58 = vadd.f32 %v1500_v52, %v2152_v34  ;;  %v1503_v59 = vadd.f32 %v1502_v57, %v1501_v54  ;;  %v1614_v60 = vpop.f32.mrb[7].mxu1 }
 0x108   : > { %v1615_v61 = vadd.f32 %v1614_v60, %v1613_v56 }
 0x109   : > { %v1080_v62 = vadd.f32 %v1612_v55, %v919_v58  ;;  %v922_v63 = vadd.f32 %v1503_v59, %v2152_v34 }
 0x10b   : > { %1856 = vtanh.f32 %v1080_v62  ;;  %v1083_v0 = vadd.f32 %v1615_v61, %v922_v63  ;;  %v1504_v1 = vpop.f32.mrb[8].mxu0 }
 0x10c   : > { %v1616_v2 = vpop.f32.mrb[8].mxu1  ;;  %v1505_v3 = vpop.f32.mrb[9].mxu0 }
 0x10d   : > { %v1853_v4 = vpop.eup %1852  ;;  %1858 = vtanh.f32 %v1083_v0  ;;  %v1506_v5 = vadd.f32 %v1505_v3, %v1504_v1  ;;  %v1617_v6 = vpop.f32.mrb[9].mxu1 }
 0x10e   : > { %v1507_v7 = vpop.f32.mrb[10].mxu0  ;;  %1230 = vst [vmem:[%s2162_s20] sm:$0xff] %v1853_v4  ;;  %v1618_v8 = vadd.f32 %v1617_v6, %v1616_v2  ;;  %v1619_v9 = vpop.f32.mrb[10].mxu1 }
 0x10f   : > { %v1508_v10 = vpop.f32.mrb[11].mxu0  ;;  %v1855_v11 = vpop.eup %1854  ;;  %v927_v12 = vadd.f32 %v1506_v5, %v2152_v34 }
 0x110   : > { %v1509_v13 = vadd.f32 %v1508_v10, %v1507_v7  ;;  %v1620_v14 = vpop.f32.mrb[11].mxu1  ;;  %1231 = vst [vmem:[%s2162_s20 + $0x8] sm:$0xff] %v1855_v11 }
 0x111   : > { %v1621_v15 = vadd.f32 %v1620_v14, %v1619_v9  ;;  %v1088_v16 = vadd.f32 %v1618_v8, %v927_v12 }
 0x112   : > { %v930_v17 = vadd.f32 %v1509_v13, %v2152_v34 }
 0x113   : > { %1860 = vtanh.f32 %v1088_v16  ;;  %v1510_v19 = vpop.f32.mrb[12].mxu0 }
 0x114   : > { %v1091_v18 = vadd.f32 %v1621_v15, %v930_v17  ;;  %v1622_v20 = vpop.f32.mrb[12].mxu1  ;;  %v1511_v21 = vpop.f32.mrb[13].mxu0 }
 0x115   : > { %v1857_v22 = vpop.eup %1856  ;;  %v1512_v23 = vadd.f32 %v1511_v21, %v1510_v19  ;;  %v1623_v24 = vpop.f32.mrb[13].mxu1 }
 0x116   : > { %1862 = vtanh.f32 %v1091_v18  ;;  %v1513_v25 = vpop.f32.mrb[14].mxu0  ;;  %1232 = vst [vmem:[%s2162_s20 + $0x10] sm:$0xff] %v1857_v22  ;;  %v1624_v26 = vadd.f32 %v1623_v24, %v1622_v20  ;;  %v1625_v27 = vpop.f32.mrb[14].mxu1 }
 0x117   : > { %v1514_v28 = vpop.f32.mrb[15].mxu0  ;;  %v1859_v29 = vpop.eup %1858  ;;  %v935_v30 = vadd.f32 %v1512_v23, %v2152_v34 }
 0x118   : > { %v1515_v31 = vadd.f32 %v1514_v28, %v1513_v25  ;;  %v1626_v32 = vpop.f32.mrb[15].mxu1  ;;  %1233 = vst [vmem:[%s2162_s20 + $0x18] sm:$0xff] %v1859_v29 }
 0x119   : > { %v1627_v33 = vadd.f32 %v1626_v32, %v1625_v27  ;;  %v1096_v35 = vadd.f32 %v1624_v26, %v935_v30 }
 0x11a   : > { %v938_v36 = vadd.f32 %v1515_v31, %v2152_v34 }
 0x11b   : > { %1864 = vtanh.f32 %v1096_v35  ;;  %v1516_v38 = vpop.f32.mrb[16].mxu0 }
 0x11c   : > { %v1099_v37 = vadd.f32 %v1627_v33, %v938_v36  ;;  %v1628_v39 = vpop.f32.mrb[16].mxu1  ;;  %v1517_v40 = vpop.f32.mrb[17].mxu0 }
 0x11d   : > { %v1861_v41 = vpop.eup %1860  ;;  %v1518_v42 = vadd.f32 %v1517_v40, %v1516_v38  ;;  %v1629_v43 = vpop.f32.mrb[17].mxu1 }
 0x11e   : > { %1866 = vtanh.f32 %v1099_v37  ;;  %v1519_v44 = vpop.f32.mrb[18].mxu0  ;;  %1234 = vst [vmem:[%s2162_s20 + $0x20] sm:$0xff] %v1861_v41  ;;  %v1630_v45 = vadd.f32 %v1629_v43, %v1628_v39  ;;  %v1631_v46 = vpop.f32.mrb[18].mxu1 }
 0x11f   : > { %v1520_v47 = vpop.f32.mrb[19].mxu0  ;;  %v943_v49 = vadd.f32 %v1518_v42, %v2152_v34  ;;  %v1632_v51 = vpop.f32.mrb[19].mxu1 }
 0x120   : > { %v1863_v48 = vpop.eup %1862  ;;  %v1521_v50 = vadd.f32 %v1520_v47, %v1519_v44  ;;  %v1633_v52 = vadd.f32 %v1632_v51, %v1631_v46 }
 0x121   : > { %1235 = vst [vmem:[%s2162_s20 + $0x28] sm:$0xff] %v1863_v48  ;;  %v1104_v53 = vadd.f32 %v1630_v45, %v943_v49 }
 0x122   : > { %v946_v54 = vadd.f32 %v1521_v50, %v2152_v34 }
 0x123   : > { %1868 = vtanh.f32 %v1104_v53  ;;  %v1522_v56 = vpop.f32.mrb[20].mxu0 }
 0x124   : > { %v1107_v55 = vadd.f32 %v1633_v52, %v946_v54  ;;  %v1634_v57 = vpop.f32.mrb[20].mxu1  ;;  %v1523_v58 = vpop.f32.mrb[21].mxu0 }
 0x125   : > { %v1865_v59 = vpop.eup %1864  ;;  %v1524_v60 = vadd.f32 %v1523_v58, %v1522_v56  ;;  %v1635_v61 = vpop.f32.mrb[21].mxu1 }
 0x126   : > { %1870 = vtanh.f32 %v1107_v55  ;;  %v1525_v62 = vpop.f32.mrb[22].mxu0  ;;  %1236 = vst [vmem:[%s2162_s20 + $0x30] sm:$0xff] %v1865_v59  ;;  %v1636_v63 = vadd.f32 %v1635_v61, %v1634_v57  ;;  %v1637_v0 = vpop.f32.mrb[22].mxu1 }
 0x127   : > { %v1526_v1 = vpop.f32.mrb[23].mxu0  ;;  %v951_v3 = vadd.f32 %v1524_v60, %v2152_v34  ;;  %v1638_v5 = vpop.f32.mrb[23].mxu1 }
 0x128   : > { %v1867_v2 = vpop.eup %1866  ;;  %v1527_v4 = vadd.f32 %v1526_v1, %v1525_v62  ;;  %v1639_v6 = vadd.f32 %v1638_v5, %v1637_v0 }
 0x129   : > { %1237 = vst [vmem:[%s2162_s20 + $0x38] sm:$0xff] %v1867_v2  ;;  %v1112_v7 = vadd.f32 %v1636_v63, %v951_v3 }
 0x12a   : > { %v954_v8 = vadd.f32 %v1527_v4, %v2152_v34 }
 0x12b   : > { %1872 = vtanh.f32 %v1112_v7  ;;  %v1528_v10 = vpop.f32.mrb[24].mxu0 }
 0x12c   : > { %v1115_v9 = vadd.f32 %v1639_v6, %v954_v8  ;;  %v1640_v11 = vpop.f32.mrb[24].mxu1  ;;  %v1529_v12 = vpop.f32.mrb[25].mxu0 }
 0x12d   : > { %v1869_v13 = vpop.eup %1868  ;;  %v1530_v14 = vadd.f32 %v1529_v12, %v1528_v10  ;;  %v1641_v15 = vpop.f32.mrb[25].mxu1 }
 0x12e   : > { %1874 = vtanh.f32 %v1115_v9  ;;  %v1531_v16 = vpop.f32.mrb[26].mxu0  ;;  %1238 = vst [vmem:[%s2162_s20 + $0x40] sm:$0xff] %v1869_v13  ;;  %v1642_v17 = vadd.f32 %v1641_v15, %v1640_v11  ;;  %v1643_v18 = vpop.f32.mrb[26].mxu1 }
 0x12f   : > { %v1532_v19 = vpop.f32.mrb[27].mxu0  ;;  %v959_v21 = vadd.f32 %v1530_v14, %v2152_v34  ;;  %v1644_v23 = vpop.f32.mrb[27].mxu1 }
 0x130   : > { %v1871_v20 = vpop.eup %1870  ;;  %v1533_v22 = vadd.f32 %v1532_v19, %v1531_v16  ;;  %v1645_v24 = vadd.f32 %v1644_v23, %v1643_v18 }
 0x131   : > { %1239 = vst [vmem:[%s2162_s20 + $0x48] sm:$0xff] %v1871_v20  ;;  %v1120_v25 = vadd.f32 %v1642_v17, %v959_v21 }
 0x132   : > { %v962_v26 = vadd.f32 %v1533_v22, %v2152_v34 }
 0x133   : > { %1876 = vtanh.f32 %v1120_v25  ;;  %v1534_v28 = vpop.f32.mrb[28].mxu0 }
 0x134   : > { %v1123_v27 = vadd.f32 %v1645_v24, %v962_v26  ;;  %v1646_v29 = vpop.f32.mrb[28].mxu1  ;;  %v1535_v30 = vpop.f32.mrb[29].mxu0 }
 0x135   : > { %v1873_v31 = vpop.eup %1872  ;;  %v1536_v32 = vadd.f32 %v1535_v30, %v1534_v28  ;;  %v1647_v33 = vpop.f32.mrb[29].mxu1 }
 0x136   : > { %1878 = vtanh.f32 %v1123_v27  ;;  %v1537_v35 = vpop.f32.mrb[30].mxu0  ;;  %1240 = vst [vmem:[%s2162_s20 + $0x50] sm:$0xff] %v1873_v31  ;;  %v1648_v36 = vadd.f32 %v1647_v33, %v1646_v29  ;;  %v1649_v37 = vpop.f32.mrb[30].mxu1 }
 0x137   : > { %v1538_v38 = vpop.f32.mrb[31].mxu0  ;;  %v967_v40 = vadd.f32 %v1536_v32, %v2152_v34  ;;  %v1650_v42 = vpop.f32.mrb[31].mxu1 }
 0x138   : > { %v1875_v39 = vpop.eup %1874  ;;  %v1539_v41 = vadd.f32 %v1538_v38, %v1537_v35  ;;  %v1651_v43 = vadd.f32 %v1650_v42, %v1649_v37 }
 0x139   : > { %1241 = vst [vmem:[%s2162_s20 + $0x58] sm:$0xff] %v1875_v39  ;;  %v1128_v44 = vadd.f32 %v1648_v36, %v967_v40 }
 0x13a   : > { %v970_v45 = vadd.f32 %v1539_v41, %v2152_v34 }
 0x13b   : > { %1880 = vtanh.f32 %v1128_v44  ;;  %v1540_v47 = vpop.f32.mrb[32].mxu0 }
 0x13c   : > { %v1131_v46 = vadd.f32 %v1651_v43, %v970_v45  ;;  %v1652_v48 = vpop.f32.mrb[32].mxu1  ;;  %v1541_v49 = vpop.f32.mrb[33].mxu0 }
 0x13d   : > { %v1877_v50 = vpop.eup %1876  ;;  %v1542_v51 = vadd.f32 %v1541_v49, %v1540_v47  ;;  %v1653_v52 = vpop.f32.mrb[33].mxu1 }
 0x13e   : > { %1882 = vtanh.f32 %v1131_v46  ;;  %v1543_v53 = vpop.f32.mrb[34].mxu0  ;;  %1242 = vst [vmem:[%s2162_s20 + $0x60] sm:$0xff] %v1877_v50  ;;  %v1654_v54 = vadd.f32 %v1653_v52, %v1652_v48  ;;  %v1655_v55 = vpop.f32.mrb[34].mxu1 }
 0x13f   : > { %v1544_v56 = vpop.f32.mrb[35].mxu0  ;;  %v975_v58 = vadd.f32 %v1542_v51, %v2152_v34  ;;  %v1656_v60 = vpop.f32.mrb[35].mxu1 }
 0x140   : > { %v1879_v57 = vpop.eup %1878  ;;  %v1545_v59 = vadd.f32 %v1544_v56, %v1543_v53  ;;  %v1657_v61 = vadd.f32 %v1656_v60, %v1655_v55 }
 0x141   : > { %1243 = vst [vmem:[%s2162_s20 + $0x68] sm:$0xff] %v1879_v57  ;;  %v1136_v62 = vadd.f32 %v1654_v54, %v975_v58 }
 0x142   : > { %v978_v63 = vadd.f32 %v1545_v59, %v2152_v34 }
 0x143   : > { %1884 = vtanh.f32 %v1136_v62  ;;  %v1546_v1 = vpop.f32.mrb[36].mxu0 }
 0x144   : > { %v1139_v0 = vadd.f32 %v1657_v61, %v978_v63  ;;  %v1658_v2 = vpop.f32.mrb[36].mxu1  ;;  %v1547_v3 = vpop.f32.mrb[37].mxu0 }
 0x145   : > { %v1881_v4 = vpop.eup %1880  ;;  %v1548_v5 = vadd.f32 %v1547_v3, %v1546_v1  ;;  %v1659_v6 = vpop.f32.mrb[37].mxu1 }
 0x146   : > { %1886 = vtanh.f32 %v1139_v0  ;;  %v1549_v7 = vpop.f32.mrb[38].mxu0  ;;  %1244 = vst [vmem:[%s2162_s20 + $0x70] sm:$0xff] %v1881_v4  ;;  %v1660_v8 = vadd.f32 %v1659_v6, %v1658_v2  ;;  %v1661_v9 = vpop.f32.mrb[38].mxu1 }
 0x147   : > { %v1550_v10 = vpop.f32.mrb[39].mxu0  ;;  %v983_v12 = vadd.f32 %v1548_v5, %v2152_v34  ;;  %v1662_v14 = vpop.f32.mrb[39].mxu1 }
 0x148   : > { %v1883_v11 = vpop.eup %1882  ;;  %v1551_v13 = vadd.f32 %v1550_v10, %v1549_v7  ;;  %v1663_v15 = vadd.f32 %v1662_v14, %v1661_v9 }
 0x149   : > { %1245 = vst [vmem:[%s2162_s20 + $0x78] sm:$0xff] %v1883_v11  ;;  %v1144_v16 = vadd.f32 %v1660_v8, %v983_v12 }
 0x14a   : > { %v986_v17 = vadd.f32 %v1551_v13, %v2152_v34 }
 0x14b   : > { %1888 = vtanh.f32 %v1144_v16  ;;  %v1552_v19 = vpop.f32.mrb[40].mxu0 }
 0x14c   : > { %v1147_v18 = vadd.f32 %v1663_v15, %v986_v17  ;;  %v1664_v20 = vpop.f32.mrb[40].mxu1  ;;  %v1553_v21 = vpop.f32.mrb[41].mxu0 }
 0x14d   : > { %v1885_v22 = vpop.eup %1884  ;;  %v1554_v23 = vadd.f32 %v1553_v21, %v1552_v19  ;;  %v1665_v24 = vpop.f32.mrb[41].mxu1 }
 0x14e   : > { %1890 = vtanh.f32 %v1147_v18  ;;  %v1555_v25 = vpop.f32.mrb[42].mxu0  ;;  %1246 = vst [vmem:[%s2162_s20 + $0x80] sm:$0xff] %v1885_v22  ;;  %v1666_v26 = vadd.f32 %v1665_v24, %v1664_v20  ;;  %v1667_v27 = vpop.f32.mrb[42].mxu1 }
 0x14f   : > { %v1556_v28 = vpop.f32.mrb[43].mxu0  ;;  %v991_v30 = vadd.f32 %v1554_v23, %v2152_v34  ;;  %v1668_v32 = vpop.f32.mrb[43].mxu1 }
 0x150   : > { %v1887_v29 = vpop.eup %1886  ;;  %v1557_v31 = vadd.f32 %v1556_v28, %v1555_v25  ;;  %v1669_v33 = vadd.f32 %v1668_v32, %v1667_v27 }
 0x151   : > { %1247 = vst [vmem:[%s2162_s20 + $0x88] sm:$0xff] %v1887_v29  ;;  %v1152_v35 = vadd.f32 %v1666_v26, %v991_v30 }
 0x152   : > { %v994_v36 = vadd.f32 %v1557_v31, %v2152_v34 }
 0x153   : > { %1892 = vtanh.f32 %v1152_v35  ;;  %v1558_v38 = vpop.f32.mrb[44].mxu0 }
 0x154   : > { %v1155_v37 = vadd.f32 %v1669_v33, %v994_v36  ;;  %v1670_v39 = vpop.f32.mrb[44].mxu1  ;;  %v1559_v40 = vpop.f32.mrb[45].mxu0 }
 0x155   : > { %v1889_v41 = vpop.eup %1888  ;;  %v1560_v42 = vadd.f32 %v1559_v40, %v1558_v38  ;;  %v1671_v43 = vpop.f32.mrb[45].mxu1 }
 0x156   : > { %1894 = vtanh.f32 %v1155_v37  ;;  %v1561_v44 = vpop.f32.mrb[46].mxu0  ;;  %1248 = vst [vmem:[%s2162_s20 + $0x90] sm:$0xff] %v1889_v41  ;;  %v1672_v45 = vadd.f32 %v1671_v43, %v1670_v39  ;;  %v1673_v46 = vpop.f32.mrb[46].mxu1 }
 0x157   : > { %v1562_v47 = vpop.f32.mrb[47].mxu0  ;;  %v999_v49 = vadd.f32 %v1560_v42, %v2152_v34  ;;  %v1674_v51 = vpop.f32.mrb[47].mxu1 }
 0x158   : > { %v1891_v48 = vpop.eup %1890  ;;  %v1563_v50 = vadd.f32 %v1562_v47, %v1561_v44  ;;  %v1675_v52 = vadd.f32 %v1674_v51, %v1673_v46 }
 0x159   : > { %1249 = vst [vmem:[%s2162_s20 + $0x98] sm:$0xff] %v1891_v48  ;;  %v1160_v53 = vadd.f32 %v1672_v45, %v999_v49 }
 0x15a   : > { %v1002_v54 = vadd.f32 %v1563_v50, %v2152_v34 }
 0x15b   : > { %1896 = vtanh.f32 %v1160_v53  ;;  %v1564_v56 = vpop.f32.mrb[48].mxu0 }
 0x15c   : > { %v1163_v55 = vadd.f32 %v1675_v52, %v1002_v54  ;;  %v1676_v57 = vpop.f32.mrb[48].mxu1  ;;  %v1565_v58 = vpop.f32.mrb[49].mxu0 }
 0x15d   : > { %v1893_v59 = vpop.eup %1892  ;;  %v1566_v60 = vadd.f32 %v1565_v58, %v1564_v56  ;;  %v1677_v61 = vpop.f32.mrb[49].mxu1 }
 0x15e   : > { %1898 = vtanh.f32 %v1163_v55  ;;  %v1567_v62 = vpop.f32.mrb[50].mxu0  ;;  %1250 = vst [vmem:[%s2162_s20 + $0xa0] sm:$0xff] %v1893_v59  ;;  %v1678_v63 = vadd.f32 %v1677_v61, %v1676_v57  ;;  %v1679_v0 = vpop.f32.mrb[50].mxu1 }
 0x15f   : > { %v1568_v1 = vpop.f32.mrb[51].mxu0  ;;  %v1007_v3 = vadd.f32 %v1566_v60, %v2152_v34  ;;  %v1680_v5 = vpop.f32.mrb[51].mxu1 }
 0x160   : > { %v1895_v2 = vpop.eup %1894  ;;  %v1569_v4 = vadd.f32 %v1568_v1, %v1567_v62  ;;  %v1681_v6 = vadd.f32 %v1680_v5, %v1679_v0 }
 0x161   : > { %1251 = vst [vmem:[%s2162_s20 + $0xa8] sm:$0xff] %v1895_v2  ;;  %v1168_v7 = vadd.f32 %v1678_v63, %v1007_v3 }
 0x162   : > { %v1010_v8 = vadd.f32 %v1569_v4, %v2152_v34 }
 0x163   : > { %1900 = vtanh.f32 %v1168_v7  ;;  %v1570_v10 = vpop.f32.mrb[52].mxu0 }
 0x164   : > { %v1171_v9 = vadd.f32 %v1681_v6, %v1010_v8  ;;  %v1682_v11 = vpop.f32.mrb[52].mxu1  ;;  %v1571_v12 = vpop.f32.mrb[53].mxu0 }
 0x165   : > { %v1897_v13 = vpop.eup %1896  ;;  %v1572_v14 = vadd.f32 %v1571_v12, %v1570_v10  ;;  %v1683_v15 = vpop.f32.mrb[53].mxu1 }
 0x166   : > { %1902 = vtanh.f32 %v1171_v9  ;;  %v1573_v16 = vpop.f32.mrb[54].mxu0  ;;  %1252 = vst [vmem:[%s2162_s20 + $0xb0] sm:$0xff] %v1897_v13  ;;  %v1684_v17 = vadd.f32 %v1683_v15, %v1682_v11  ;;  %v1685_v18 = vpop.f32.mrb[54].mxu1 }
 0x167   : > { %v1574_v19 = vpop.f32.mrb[55].mxu0  ;;  %v1015_v21 = vadd.f32 %v1572_v14, %v2152_v34  ;;  %v1686_v23 = vpop.f32.mrb[55].mxu1 }
 0x168   : > { %v1899_v20 = vpop.eup %1898  ;;  %v1575_v22 = vadd.f32 %v1574_v19, %v1573_v16  ;;  %v1687_v24 = vadd.f32 %v1686_v23, %v1685_v18 }
 0x169   : > { %1253 = vst [vmem:[%s2162_s20 + $0xb8] sm:$0xff] %v1899_v20  ;;  %v1176_v25 = vadd.f32 %v1684_v17, %v1015_v21 }
 0x16a   : > { %v1018_v26 = vadd.f32 %v1575_v22, %v2152_v34 }
 0x16b   : > { %1904 = vtanh.f32 %v1176_v25  ;;  %v1576_v28 = vpop.f32.mrb[56].mxu0 }
 0x16c   : > { %v1179_v27 = vadd.f32 %v1687_v24, %v1018_v26  ;;  %v1688_v29 = vpop.f32.mrb[56].mxu1  ;;  %v1577_v30 = vpop.f32.mrb[57].mxu0 }
 0x16d   : > { %v1901_v31 = vpop.eup %1900  ;;  %v1578_v32 = vadd.f32 %v1577_v30, %v1576_v28  ;;  %v1689_v33 = vpop.f32.mrb[57].mxu1 }
 0x16e   : > { %1906 = vtanh.f32 %v1179_v27  ;;  %v1579_v35 = vpop.f32.mrb[58].mxu0  ;;  %1254 = vst [vmem:[%s2162_s20 + $0xc0] sm:$0xff] %v1901_v31  ;;  %v1690_v36 = vadd.f32 %v1689_v33, %v1688_v29  ;;  %v1691_v37 = vpop.f32.mrb[58].mxu1 }
 0x16f   : > { %v1580_v38 = vpop.f32.mrb[59].mxu0  ;;  %v1023_v40 = vadd.f32 %v1578_v32, %v2152_v34  ;;  %v1692_v42 = vpop.f32.mrb[59].mxu1 }
 0x170   : > { %v1903_v39 = vpop.eup %1902  ;;  %v1581_v41 = vadd.f32 %v1580_v38, %v1579_v35  ;;  %v1693_v43 = vadd.f32 %v1692_v42, %v1691_v37 }
 0x171   : > { %1255 = vst [vmem:[%s2162_s20 + $0xc8] sm:$0xff] %v1903_v39  ;;  %v1184_v44 = vadd.f32 %v1690_v36, %v1023_v40 }
 0x172   : > { %v1026_v45 = vadd.f32 %v1581_v41, %v2152_v34 }
 0x173   : > { %1908 = vtanh.f32 %v1184_v44  ;;  %v1582_v47 = vpop.f32.mrb[60].mxu0 }
 0x174   : > { %v1187_v46 = vadd.f32 %v1693_v43, %v1026_v45  ;;  %v1694_v48 = vpop.f32.mrb[60].mxu1  ;;  %v1583_v49 = vpop.f32.mrb[61].mxu0 }
 0x175   : > { %v1905_v50 = vpop.eup %1904  ;;  %v1584_v51 = vadd.f32 %v1583_v49, %v1582_v47  ;;  %v1695_v52 = vpop.f32.mrb[61].mxu1 }
 0x176   : > { %1910 = vtanh.f32 %v1187_v46  ;;  %v1585_v53 = vpop.f32.mrb[62].mxu0  ;;  %1256 = vst [vmem:[%s2162_s20 + $0xd0] sm:$0xff] %v1905_v50  ;;  %v1696_v54 = vadd.f32 %v1695_v52, %v1694_v48  ;;  %v1697_v55 = vpop.f32.mrb[62].mxu1 }
 0x177   : > { %v1586_v56 = vpop.f32.mrb[63].mxu0  ;;  %v1031_v58 = vadd.f32 %v1584_v51, %v2152_v34  ;;  %v1698_v60 = vpop.f32.mrb[63].mxu1 }
 0x178   : > { %v1907_v57 = vpop.eup %1906  ;;  %v1587_v59 = vadd.f32 %v1586_v56, %v1585_v53  ;;  %v1699_v61 = vadd.f32 %v1698_v60, %v1697_v55 }
 0x179   : > { %1257 = vst [vmem:[%s2162_s20 + $0xd8] sm:$0xff] %v1907_v57  ;;  %v1192_v62 = vadd.f32 %v1696_v54, %v1031_v58 }
 0x17a   : > { %v1034_v63 = vadd.f32 %v1587_v59, %v2152_v34 }
 0x17b   : > { %1912 = vtanh.f32 %v1192_v62 }
 0x17c   : > { %v1195_v0 = vadd.f32 %v1699_v61, %v1034_v63 }
 0x17d   : > { %v1909_v1 = vpop.eup %1908 }
 0x17e   : > { %1914 = vtanh.f32 %v1195_v0  ;;  %1258 = vst [vmem:[%s2162_s20 + $0xe0] sm:$0xff] %v1909_v1 }
 0x180   : > { %v1911_v2 = vpop.eup %1910 }
 0x181   : > { %1259 = vst [vmem:[%s2162_s20 + $0xe8] sm:$0xff] %v1911_v2 }
 0x185   : > { %v1913_v3 = vpop.eup %1912 }
 0x186   : > { %1260 = vst [vmem:[%s2162_s20 + $0xf0] sm:$0xff] %v1913_v3 }
 0x188   : > { %v1915_v4 = vpop.eup %1914 }
 0x189   : > { %1261 = vst [vmem:[%s2162_s20 + $0xf8] sm:$0xff] %v1915_v4 }
 0x18a PF: > { %s13_s14 = sadd.s32 1, %s1938_s14   ;;  %s2237_s12 = smov %s1934_s13 }
 0x18b   : > { %p10_p5 = scmp.ge.s32.totalorder %s13_s14, 4   ;;  %s2238_s13 = smov %s2240_s15 }
 0x18d   :  { %12 = sbr.rel (!%p10_p5) target bundleno = 2 (0x2), region = 68 }

</bundles_post_ra>
